<compile_context>
chip_gen: v6e
topology: v6e:2x2x1
jax: 0.10.0
libtpu: 0.0.40
codegen_flags: <defaults>
</compile_context>

<pallas_src>
import functools

import numpy as np
import jax
import jax.numpy as jnp
from jax import lax
from jax.experimental import pallas as pl
from jax.experimental.pallas import tpu as pltpu


# ----------------------------------------------------------------------------
# Bilinear interpolation matrix matching F.interpolate(mode='bilinear')
# (half-pixel / align_corners semantics, including the src<0 clamp)
# ----------------------------------------------------------------------------
def bilinear_matrix(in_size, out_size, align_corners):
    M = np.zeros((out_size, in_size), dtype=np.float32)
    for o in range(out_size):
        if align_corners:
            src = 0.0 if out_size == 1 else o * (in_size - 1) / (out_size - 1)
        else:
            src = (o + 0.5) * in_size / out_size - 0.5
            if src < 0.0:
                src = 0.0
        i0 = min(int(np.floor(src)), in_size - 1)
        i1 = min(i0 + 1, in_size - 1)
        w1 = src - i0
        M[o, i0] += 1.0 - w1
        M[o, i1] += w1
    return M


# ----------------------------------------------------------------------------
# Fold the 3 W-axis taps (and the W zero-padding) of a 3x3 conv into banded
# (Wo*Cin, Wo*Cout) matrices, one per dy tap.  Applying them to a flattened
# (rows, Wo*Cin) image is a single lane-dense MXU matmul per dy.
# ----------------------------------------------------------------------------
def banded_conv_weights(w_hwio, Wo):
    kh, kw, cin, cout = w_hwio.shape
    assert (kh, kw) == (3, 3)
    w = np.asarray(w_hwio, dtype=np.float32)
    B = np.zeros((3, Wo * cin, Wo * cout), dtype=np.float32)
    for dy in range(3):
        for dx in range(3):
            for wo in range(Wo):
                wi = wo + dx - 1                    # pad=1 -> out-of-range = 0
                if 0 <= wi < Wo:
                    B[dy, wi * cin:(wi + 1) * cin,
                          wo * cout:(wo + 1) * cout] += w[dy, dx]
    return B


# ----------------------------------------------------------------------------
# Batch-packing factor: raise the conv matmul M dimension, keep grid >= 2
# when possible (v7x: 2 TensorCores share the parallel grid axis).
# ----------------------------------------------------------------------------
def choose_nb(N, Ho, max_rows=512):
    divs = [d for d in range(1, N + 1)
            if N % d == 0 and d * (Ho + 8) <= max_rows]
    ge2 = [d for d in divs if N // d >= 2]
    if ge2:
        return max(ge2)
    return max(divs) if divs else 1


# ----------------------------------------------------------------------------
# Fused Pallas kernel builder (cached per static shape)
# ----------------------------------------------------------------------------
@functools.lru_cache(maxsize=None)
def make_block_kernel(N, H, W, Cx, Cs, Cm, Co, align_corners, nb):
    Ho = H * 2 - int(align_corners)
    Wo = W * 2 - int(align_corners)

    stride = Ho + 8                 # per-image row stride in the packed scratch
    R = nb * stride                 # packed data-region rows (after the 8-row top pad)
    R_out = R - 8                   # last image ends 8 rows before the region end
    Wup = Wo * Cx                   # lane width of the upsampled-x section
    Wc = Wo * (Cx + Cs)             # fused concat lane width (conv1 K)
    Wm = Wo * Cm                    # conv1 output / conv2 input lane width
    Wco = Wo * Co                   # conv2 output lane width (>=128 -> lane-dense stores)
    G = N // nb

    bf16 = jnp.bfloat16
    f32 = jnp.float32

    def kernel(x_ref, skip_ref, mh_ref, mwc_ref,
               w1_ref, s1_ref, b1_ref,
               w2_ref, s2_ref, b2_ref,
               o_ref,
               cat_buf, y1_buf):
        # ---- 0) zero ONLY the halo / separator rows (data rows are fully ----
        #         overwritten below).  Done every step: with a "parallel"
        #         grid axis each core owns its scratch and may never run
        #         program_id==0, so a once-only init would be unsafe.
        zc = jnp.zeros((8, Wc), bf16)
        zy = jnp.zeros((8, Wm), bf16)
        cat_buf[0:8, :] = zc                      # top halo (row 7 is used)
        y1_buf[0:8, :] = zy
        cat_buf[R:R + 8, :] = zc                  # bottom halo of last image
        y1_buf[R:R + 8, :] = zy
        for j in range(nb - 1):                   # separators (cat_buf only:
            r = 8 + j * stride + Ho               #  never written later)
            cat_buf[r:r + 8, :] = zc

        # ---- 1) bilinear upsample per image (bf16 MXU) + fused concat -------
        for j in range(nb):
            r0 = 8 + j * stride
            xw = jnp.dot(x_ref[j], mwc_ref[...],
                         preferred_element_type=f32)               # (H, Wo*Cx)
            up = jnp.dot(mh_ref[...], xw.astype(bf16),
                         preferred_element_type=f32)                # (Ho, Wo*Cx)
            cat_buf[r0:r0 + Ho, 0:Wup] = up.astype(bf16)
            cat_buf[r0:r0 + Ho, Wup:Wc] = skip_ref[j]

        # ---- 2) conv1 (3x3, pad=1) + folded BN + ReLU ------------------------
        # Concat fused into K; W taps folded into banded matrices, so the whole
        # layer is 3 row-shifted lane-dense matmuls with M ~= nb*Ho.
        acc1 = jnp.zeros((R_out, Wm), f32)
        for dy in range(3):
            acc1 = acc1 + jnp.dot(cat_buf[7 + dy:7 + dy + R_out, :], w1_ref[dy],
                                  preferred_element_type=f32)
        y1 = jnp.maximum(acc1 * s1_ref[...] + b1_ref[...], 0.0)
        y1_buf[8:8 + R_out, :] = y1.astype(bf16)   # intermediate stays in VMEM
        for j in range(nb - 1):                    # re-zero separator bands the
            r = 8 + j * stride + Ho                # store above just clobbered
            y1_buf[r:r + 8, :] = zy

        # ---- 3) conv2 (3x3, pad=1) + folded BN + ReLU, lane-dense store -----
        acc2 = jnp.zeros((R_out, Wco), f32)
        for dy in range(3):
            acc2 = acc2 + jnp.dot(y1_buf[7 + dy:7 + dy + R_out, :], w2_ref[dy],
                                  preferred_element_type=f32)
        out = jnp.maximum(acc2 * s2_ref[...] + b2_ref[...], 0.0)
        for j in range(nb):
            o_ref[j] = out[j * stride:j * stride + Ho, :]

    # advisory cost hint for XLA scheduling around the custom call
    flops = 2 * N * (H * (W * Cx) * Wup            # width upsample
                     + Ho * H * Wup                # height upsample
                     + 3 * Ho * Wc * Wm            # conv1 (banded)
                     + 3 * Ho * Wm * Wco)          # conv2 (banded)
    bytes_accessed = (2 * N * H * W * Cx + 2 * N * Ho * Wo * Cs   # bf16 inputs
                      + 4 * N * Ho * Wco                          # f32 output
                      + 2 * (Ho * H + W * Cx * Wup + 3 * Wc * Wm + 3 * Wm * Wco)
                      + 4 * 2 * (Wm + Wco))

    return pl.pallas_call(
        kernel,
        out_shape=jax.ShapeDtypeStruct((N, Ho, Wco), jnp.float32),
        grid=(G,),
        in_specs=[
            pl.BlockSpec((nb, H, W * Cx), lambda g: (g, 0, 0)),      # x (flat lanes)
            pl.BlockSpec((nb, Ho, Wo * Cs), lambda g: (g, 0, 0)),    # skip
            pl.BlockSpec((Ho, H), lambda g: (0, 0)),                 # Mh
            pl.BlockSpec((W * Cx, Wup), lambda g: (0, 0)),           # kron(Mw^T, I_Cx)
            pl.BlockSpec((3, Wc, Wm), lambda g: (0, 0, 0)),          # banded w1 (cat-fused)
            pl.BlockSpec((1, Wm), lambda g: (0, 0)),                 # scale1 (tiled)
            pl.BlockSpec((1, Wm), lambda g: (0, 0)),                 # bias1  (tiled)
            pl.BlockSpec((3, Wm, Wco), lambda g: (0, 0, 0)),         # banded w2
            pl.BlockSpec((1, Wco), lambda g: (0, 0)),                # scale2 (tiled)
            pl.BlockSpec((1, Wco), lambda g: (0, 0)),                # bias2  (tiled)
        ],
        out_specs=pl.BlockSpec((nb, Ho, Wco), lambda g: (g, 0, 0)),
        scratch_shapes=[
            pltpu.VMEM((8 + R, Wc), jnp.bfloat16),   # packed, row-padded [up|skip]
            pltpu.VMEM((8 + R, Wm), jnp.bfloat16),   # packed, row-padded conv1 out
        ],
        compiler_params=pltpu.CompilerParams(
            dimension_semantics=("parallel",)),
        cost_estimate=pl.CostEstimate(
            flops=int(flops), transcendentals=0,
            bytes_accessed=int(bytes_accessed)),
    )


# ----------------------------------------------------------------------------
# Host-side parameter preparation (done ONCE per module): banded weights,
# eval-mode BN folded into per-channel scale/bias and tiled to the lane layout.
# Conv bias (if any) folds into the BN bias identically, so bias-free convs
# are assumed without loss of generality.
# ----------------------------------------------------------------------------
def prepare_block_params(params, in_channels, skip_channels, H, W, align_corners):
    Cx = in_channels
    Ho = H * 2 - int(align_corners)
    Wo = W * 2 - int(align_corners)

    w1 = np.asarray(params[0]["w"], np.float32)            # (3,3,Cx+Cs,Cm) HWIO
    Cm = int(w1.shape[-1])
    Co = int(np.asarray(params[1]["w"]).shape[-1])

    if skip_channels == 0:
        # Module built with skip_channels == 0: use one zero dummy skip channel
        # with zero weights so the kernel signature stays uniform (no math effect).
        Cs = 1
        w1 = np.concatenate([w1, np.zeros((3, 3, 1, Cm), np.float32)], axis=2)
    else:
        Cs = skip_channels
    assert w1.shape[2] == Cx + Cs

    # Concat fused into conv1's K dimension: stack the x-part and skip-part
    # banded weights vertically -> single (3, Wo*(Cx+Cs), Wo*Cm) operand.
    w1x = banded_conv_weights(w1[:, :, :Cx, :], Wo)
    w1s = banded_conv_weights(w1[:, :, Cx:, :], Wo)
    w1b = np.concatenate([w1x, w1s], axis=1)
    w2b = banded_conv_weights(np.asarray(params[1]["w"], np.float32), Wo)

    mh = bilinear_matrix(H, Ho, align_corners)
    mw = bilinear_matrix(W, Wo, align_corners)
    mwc = np.kron(mw.T, np.eye(Cx, dtype=np.float32))

    def tile(v):
        return jnp.asarray(np.tile(np.asarray(v, np.float32), Wo)[None, :])

    prep = {
        "Mh":  jnp.asarray(mh, jnp.bfloat16),
        "MwC": jnp.asarray(mwc, jnp.bfloat16),
        "w1":  jnp.asarray(w1b, jnp.bfloat16),
        "s1":  tile(params[0]["scale"]),
        "b1":  tile(params[0]["bias"]),
        "w2":  jnp.asarray(w2b, jnp.bfloat16),
        "s2":  tile(params[1]["scale"]),
        "b2":  tile(params[1]["bias"]),
    }
    meta = dict(Cx=Cx, Cs=Cs, Cm=Cm, Co=Co, H=H, W=W, Ho=Ho, Wo=Wo,
                align_corners=align_corners)
    return prep, meta


# ----------------------------------------------------------------------------
# Block forward (NCHW in / NCHW out, like the PyTorch module)
# ----------------------------------------------------------------------------
def block_forward(x_nchw, skip_nchw, prep, meta):
    N, Cx, H, W = x_nchw.shape
    assert (Cx, H, W) == (meta["Cx"], meta["H"], meta["W"])
    Ho, Wo = meta["Ho"], meta["Wo"]
    Cs, Cm, Co = meta["Cs"], meta["Cm"], meta["Co"]

    if skip_nchw is None:
        skip_nchw = jnp.zeros((N, Cs, Ho, Wo), jnp.float32)

    # NCHW -> flattened-lane NHWC views, bf16 operands for the MXU (accumulation
    # stays f32 inside the kernel).  The (W,C) merge is free; the transpose is
    # forced by the NCHW interface.
    x_flat = jnp.transpose(x_nchw, (0, 2, 3, 1)).astype(jnp.bfloat16).reshape(N, H, W * Cx)
    s_flat = jnp.transpose(skip_nchw, (0, 2, 3, 1)).astype(jnp.bfloat16).reshape(N, Ho, Wo * Cs)

    nb = choose_nb(N, Ho)
    run = make_block_kernel(N, H, W, Cx, Cs, Cm, Co, meta["align_corners"], nb)
    out = run(x_flat, s_flat, prep["Mh"], prep["MwC"],
              prep["w1"], prep["s1"], prep["b1"],
              prep["w2"], prep["s2"], prep["b2"])
    out = out.reshape(N, Ho, Wo, Co)
    return jnp.transpose(out, (0, 3, 1, 2))                  # back to NCHW


# ----------------------------------------------------------------------------
# Parameters (deterministic, synthetic) — conv has no bias (BN follows)
# ----------------------------------------------------------------------------
def init_conv_bn(key, cin, cout):
    k = jax.random.split(key, 5)
    w = jax.random.normal(k[0], (3, 3, cin, cout), jnp.float32) * 0.1   # HWIO
    gamma = 1.0 + 0.1 * jax.random.normal(k[1], (cout,), jnp.float32)
    beta = 0.1 * jax.random.normal(k[2], (cout,), jnp.float32)
    r_mean = 0.1 * jax.random.normal(k[3], (cout,), jnp.float32)
    r_var = jnp.abs(jax.random.normal(k[4], (cout,), jnp.float32)) + 0.5
    eps = 1e-5
    scale = gamma / jnp.sqrt(r_var + eps)
    bias = beta - r_mean * scale
    return {"w": w, "scale": scale, "bias": bias}


# ----------------------------------------------------------------------------
# Pure-JAX reference (f32, high precision, for correctness check)
# ----------------------------------------------------------------------------
def reference_forward(x_nchw, skip_nchw, params, align_corners):
    N, C, H, W = x_nchw.shape
    Ho = H * 2 - int(align_corners)
    Wo = W * 2 - int(align_corners)
    Mh = jnp.asarray(bilinear_matrix(H, Ho, align_corners))
    Mw = jnp.asarray(bilinear_matrix(W, Wo, align_corners))
    x_nhwc = jnp.transpose(x_nchw, (0, 2, 3, 1)).astype(jnp.float32)
    up = jnp.einsum("nhwc,Hh,Ww->nHWc", x_nhwc, Mh, Mw,
                    precision=lax.Precision.HIGHEST)
    if skip_nchw is not None:
        up = jnp.concatenate(
            [up, jnp.transpose(skip_nchw, (0, 2, 3, 1)).astype(jnp.float32)], -1)

    def cbr(x, p):
        y = lax.conv_general_dilated(
            x, p["w"], window_strides=(1, 1), padding="SAME",
            dimension_numbers=("NHWC", "HWIO", "NHWC"),
            precision=lax.Precision.HIGHEST)
        return jnp.maximum(y * p["scale"] + p["bias"], 0.0)

    y = cbr(cbr(up, params[0]), params[1])
    return jnp.transpose(y, (0, 3, 1, 2))


if __name__ == "__main__":
    key = jax.random.PRNGKey(0)
    # N=4 exercises both batch packing (nb=2 images per grid step) and a
    # multi-step parallel grid (grid=2 -> both v7x TensorCores usable).
    N, in_channels, H, W = 4, 4, 16, 16
    skip_channels, out_channels = 4, 8
    align_corners = False

    k = jax.random.split(key, 4)
    Ho = H * 2 - int(align_corners)
    Wo = W * 2 - int(align_corners)
    x = jax.random.normal(k[0], (N, in_channels, H, W), jnp.float32)
    skip = jax.random.normal(k[1], (N, skip_channels, Ho, Wo), jnp.float32)

    params = [
        init_conv_bn(k[2], in_channels + skip_channels, out_channels),
        init_conv_bn(k[3], out_channels, out_channels),
    ]

    # Prepare once (banded weights, folded BN), reuse across calls.
    prep, meta = prepare_block_params(params, in_channels, skip_channels,
                                      H, W, align_corners)
    fwd = jax.jit(lambda a, b: block_forward(a, b, prep, meta))

    out = jax.block_until_ready(fwd(x, skip))

    ref = reference_forward(x, skip, params, align_corners)
    assert out.shape == (N, out_channels, Ho, Wo), out.shape
    out_np, ref_np = np.asarray(out, np.float32), np.asarray(ref, np.float32)
    max_err = float(np.max(np.abs(out_np - ref_np)))
    # tolerance accounts for bf16 MXU operands vs f32 reference
    assert np.allclose(out_np, ref_np, atol=1e-1, rtol=1e-1), max_err

    print("KERNEL_OK")
</pallas_src>

<mosaic_0001>
module attributes {stable_mosaic.version = 11 : i64} {
  func.func @kernel(%arg0: i32, %arg1: memref<2x16x64xbf16, #tpu.memory_space<vmem>>, %arg2: memref<2x32x128xbf16, #tpu.memory_space<vmem>>, %arg3: memref<32x16xbf16, #tpu.memory_space<vmem>>, %arg4: memref<64x128xbf16, #tpu.memory_space<vmem>>, %arg5: memref<3x256x256xbf16, #tpu.memory_space<vmem>>, %arg6: memref<1x256xf32, #tpu.memory_space<vmem>>, %arg7: memref<1x256xf32, #tpu.memory_space<vmem>>, %arg8: memref<3x256x256xbf16, #tpu.memory_space<vmem>>, %arg9: memref<1x256xf32, #tpu.memory_space<vmem>>, %arg10: memref<1x256xf32, #tpu.memory_space<vmem>>, %arg11: memref<2x32x256xf32, #tpu.memory_space<vmem>>, %arg12: memref<88x256xbf16, #tpu.memory_space<vmem>>, %arg13: memref<88x256xbf16, #tpu.memory_space<vmem>>) attributes {dimension_semantics = [#tpu.dimension_semantics<parallel>], iteration_bounds = array<i64: 2>, scalar_prefetch = 0 : i64, scratch_operands = 2 : i64, tpu.core_type = #tpu.core_type<tc>, window_params = [{transform_indices = @transform_0, window_bounds = array<i64: 2, 16, 64>}, {transform_indices = @transform_1, window_bounds = array<i64: 2, 32, 128>}, {pipeline_mode = #tpu.pipeline_mode<synchronous>, transform_indices = @transform_2, window_bounds = array<i64: 32, 16>}, {pipeline_mode = #tpu.pipeline_mode<synchronous>, transform_indices = @transform_3, window_bounds = array<i64: 64, 128>}, {pipeline_mode = #tpu.pipeline_mode<synchronous>, transform_indices = @transform_4, window_bounds = array<i64: 3, 256, 256>}, {pipeline_mode = #tpu.pipeline_mode<synchronous>, transform_indices = @transform_5, window_bounds = array<i64: 1, 256>}, {pipeline_mode = #tpu.pipeline_mode<synchronous>, transform_indices = @transform_6, window_bounds = array<i64: 1, 256>}, {pipeline_mode = #tpu.pipeline_mode<synchronous>, transform_indices = @transform_7, window_bounds = array<i64: 3, 256, 256>}, {pipeline_mode = #tpu.pipeline_mode<synchronous>, transform_indices = @transform_8, window_bounds = array<i64: 1, 256>}, {pipeline_mode = #tpu.pipeline_mode<synchronous>, transform_indices = @transform_9, window_bounds = array<i64: 1, 256>}, {transform_indices = @transform_10, window_bounds = array<i64: 2, 32, 256>}]} {
    %cst = arith.constant 0.000000e+00 : bf16
    %0 = vector.broadcast %cst : bf16 to vector<8x256xbf16>
    %cst_0 = arith.constant 0.000000e+00 : bf16
    %1 = vector.broadcast %cst_0 : bf16 to vector<8x256xbf16>
    %c0 = arith.constant 0 : index
    %c0_1 = arith.constant 0 : index
    %2 = vector.load %arg12[%c0, %c0_1] : memref<88x256xbf16, #tpu.memory_space<vmem>>, vector<8x256xbf16>
    tpu.vector_store %arg12[%c0, %c0_1], %0 {strides = array<i32>} : memref<88x256xbf16, #tpu.memory_space<vmem>>, vector<8x256xbf16>,
    %c0_2 = arith.constant 0 : index
    %c0_3 = arith.constant 0 : index
    %3 = vector.load %arg13[%c0_2, %c0_3] : memref<88x256xbf16, #tpu.memory_space<vmem>>, vector<8x256xbf16>
    tpu.vector_store %arg13[%c0_2, %c0_3], %1 {strides = array<i32>} : memref<88x256xbf16, #tpu.memory_space<vmem>>, vector<8x256xbf16>,
    %c80 = arith.constant 80 : index
    %c0_4 = arith.constant 0 : index
    %4 = vector.load %arg12[%c80, %c0_4] : memref<88x256xbf16, #tpu.memory_space<vmem>>, vector<8x256xbf16>
    tpu.vector_store %arg12[%c80, %c0_4], %0 {strides = array<i32>} : memref<88x256xbf16, #tpu.memory_space<vmem>>, vector<8x256xbf16>,
    %c80_5 = arith.constant 80 : index
    %c0_6 = arith.constant 0 : index
    %5 = vector.load %arg13[%c80_5, %c0_6] : memref<88x256xbf16, #tpu.memory_space<vmem>>, vector<8x256xbf16>
    tpu.vector_store %arg13[%c80_5, %c0_6], %1 {strides = array<i32>} : memref<88x256xbf16, #tpu.memory_space<vmem>>, vector<8x256xbf16>,
    %c40 = arith.constant 40 : index
    %c0_7 = arith.constant 0 : index
    %6 = vector.load %arg12[%c40, %c0_7] : memref<88x256xbf16, #tpu.memory_space<vmem>>, vector<8x256xbf16>
    tpu.vector_store %arg12[%c40, %c0_7], %0 {strides = array<i32>} : memref<88x256xbf16, #tpu.memory_space<vmem>>, vector<8x256xbf16>,
    %c0_8 = arith.constant 0 : index
    %c0_9 = arith.constant 0 : index
    %c0_10 = arith.constant 0 : index
    %7 = vector.load %arg1[%c0_8, %c0_9, %c0_10] : memref<2x16x64xbf16, #tpu.memory_space<vmem>>, vector<1x16x64xbf16>
    %8 = vector.shape_cast %7 : vector<1x16x64xbf16> to vector<16x64xbf16>
    %c0_11 = arith.constant 0 : index
    %c0_12 = arith.constant 0 : index
    %9 = vector.load %arg4[%c0_11, %c0_12] : memref<64x128xbf16, #tpu.memory_space<vmem>>, vector<64x128xbf16>
    %cst_13 = arith.constant dense<0.000000e+00> : vector<16x128xf32>
    %10 = tpu.matmul %8, %9, %cst_13 {dimension_numbers = #tpu.dot_dimension_numbers<[1], [0], [0], [1], [0, 0, 1, 1], [], []>} : vector<16x64xbf16>, vector<64x128xbf16>, vector<16x128xf32> -> vector<16x128xf32>
    %c0_14 = arith.constant 0 : index
    %c0_15 = arith.constant 0 : index
    %11 = vector.load %arg3[%c0_14, %c0_15] : memref<32x16xbf16, #tpu.memory_space<vmem>>, vector<32x16xbf16>
    %12 = arith.truncf %10 : vector<16x128xf32> to vector<16x128xbf16>
    %cst_16 = arith.constant dense<0.000000e+00> : vector<32x128xf32>
    %13 = tpu.matmul %11, %12, %cst_16 {dimension_numbers = #tpu.dot_dimension_numbers<[1], [0], [0], [1], [0, 0, 1, 1], [], []>} : vector<32x16xbf16>, vector<16x128xbf16>, vector<32x128xf32> -> vector<32x128xf32>
    %14 = arith.truncf %13 : vector<32x128xf32> to vector<32x128xbf16>
    %c8 = arith.constant 8 : index
    %c0_17 = arith.constant 0 : index
    %15 = vector.load %arg12[%c8, %c0_17] : memref<88x256xbf16, #tpu.memory_space<vmem>>, vector<32x128xbf16>
    tpu.vector_store %arg12[%c8, %c0_17], %14 {strides = array<i32>} : memref<88x256xbf16, #tpu.memory_space<vmem>>, vector<32x128xbf16>,
    %c0_18 = arith.constant 0 : index
    %c0_19 = arith.constant 0 : index
    %c0_20 = arith.constant 0 : index
    %16 = vector.load %arg2[%c0_18, %c0_19, %c0_20] : memref<2x32x128xbf16, #tpu.memory_space<vmem>>, vector<1x32x128xbf16>
    %17 = vector.shape_cast %16 : vector<1x32x128xbf16> to vector<32x128xbf16>
    %c8_21 = arith.constant 8 : index
    %c128 = arith.constant 128 : index
    %18 = vector.load %arg12[%c8_21, %c128] : memref<88x256xbf16, #tpu.memory_space<vmem>>, vector<32x128xbf16>
    tpu.vector_store %arg12[%c8_21, %c128], %17 {strides = array<i32>} : memref<88x256xbf16, #tpu.memory_space<vmem>>, vector<32x128xbf16>,
    %c1 = arith.constant 1 : index
    %c0_22 = arith.constant 0 : index
    %c0_23 = arith.constant 0 : index
    %19 = vector.load %arg1[%c1, %c0_22, %c0_23] : memref<2x16x64xbf16, #tpu.memory_space<vmem>>, vector<1x16x64xbf16>
    %20 = vector.shape_cast %19 : vector<1x16x64xbf16> to vector<16x64xbf16>
    %c0_24 = arith.constant 0 : index
    %c0_25 = arith.constant 0 : index
    %21 = vector.load %arg4[%c0_24, %c0_25] : memref<64x128xbf16, #tpu.memory_space<vmem>>, vector<64x128xbf16>
    %cst_26 = arith.constant dense<0.000000e+00> : vector<16x128xf32>
    %22 = tpu.matmul %20, %21, %cst_26 {dimension_numbers = #tpu.dot_dimension_numbers<[1], [0], [0], [1], [0, 0, 1, 1], [], []>} : vector<16x64xbf16>, vector<64x128xbf16>, vector<16x128xf32> -> vector<16x128xf32>
    %c0_27 = arith.constant 0 : index
    %c0_28 = arith.constant 0 : index
    %23 = vector.load %arg3[%c0_27, %c0_28] : memref<32x16xbf16, #tpu.memory_space<vmem>>, vector<32x16xbf16>
    %24 = arith.truncf %22 : vector<16x128xf32> to vector<16x128xbf16>
    %cst_29 = arith.constant dense<0.000000e+00> : vector<32x128xf32>
    %25 = tpu.matmul %23, %24, %cst_29 {dimension_numbers = #tpu.dot_dimension_numbers<[1], [0], [0], [1], [0, 0, 1, 1], [], []>} : vector<32x16xbf16>, vector<16x128xbf16>, vector<32x128xf32> -> vector<32x128xf32>
    %26 = arith.truncf %25 : vector<32x128xf32> to vector<32x128xbf16>
    %c48 = arith.constant 48 : index
    %c0_30 = arith.constant 0 : index
    %27 = vector.load %arg12[%c48, %c0_30] : memref<88x256xbf16, #tpu.memory_space<vmem>>, vector<32x128xbf16>
    tpu.vector_store %arg12[%c48, %c0_30], %26 {strides = array<i32>} : memref<88x256xbf16, #tpu.memory_space<vmem>>, vector<32x128xbf16>,
    %c1_31 = arith.constant 1 : index
    %c0_32 = arith.constant 0 : index
    %c0_33 = arith.constant 0 : index
    %28 = vector.load %arg2[%c1_31, %c0_32, %c0_33] : memref<2x32x128xbf16, #tpu.memory_space<vmem>>, vector<1x32x128xbf16>
    %29 = vector.shape_cast %28 : vector<1x32x128xbf16> to vector<32x128xbf16>
    %c48_34 = arith.constant 48 : index
    %c128_35 = arith.constant 128 : index
    %30 = vector.load %arg12[%c48_34, %c128_35] : memref<88x256xbf16, #tpu.memory_space<vmem>>, vector<32x128xbf16>
    tpu.vector_store %arg12[%c48_34, %c128_35], %29 {strides = array<i32>} : memref<88x256xbf16, #tpu.memory_space<vmem>>, vector<32x128xbf16>,
    %cst_36 = arith.constant 0.000000e+00 : f32
    %31 = vector.broadcast %cst_36 : f32 to vector<72x256xf32>
    %c7 = arith.constant 7 : index
    %c0_37 = arith.constant 0 : index
    %32 = vector.load %arg12[%c7, %c0_37] : memref<88x256xbf16, #tpu.memory_space<vmem>>, vector<72x256xbf16>
    %c0_38 = arith.constant 0 : index
    %c0_39 = arith.constant 0 : index
    %c0_40 = arith.constant 0 : index
    %33 = vector.load %arg5[%c0_38, %c0_39, %c0_40] : memref<3x256x256xbf16, #tpu.memory_space<vmem>>, vector<1x256x256xbf16>
    %34 = vector.shape_cast %33 : vector<1x256x256xbf16> to vector<256x256xbf16>
    %cst_41 = arith.constant dense<0.000000e+00> : vector<72x256xf32>
    %35 = tpu.matmul %32, %34, %cst_41 {dimension_numbers = #tpu.dot_dimension_numbers<[1], [0], [0], [1], [0, 0, 1, 1], [], []>} : vector<72x256xbf16>, vector<256x256xbf16>, vector<72x256xf32> -> vector<72x256xf32>
    %36 = arith.addf %31, %35 : vector<72x256xf32>
    %c8_42 = arith.constant 8 : index
    %c0_43 = arith.constant 0 : index
    %37 = vector.load %arg12[%c8_42, %c0_43] : memref<88x256xbf16, #tpu.memory_space<vmem>>, vector<72x256xbf16>
    %c1_44 = arith.constant 1 : index
    %c0_45 = arith.constant 0 : index
    %c0_46 = arith.constant 0 : index
    %38 = vector.load %arg5[%c1_44, %c0_45, %c0_46] : memref<3x256x256xbf16, #tpu.memory_space<vmem>>, vector<1x256x256xbf16>
    %39 = vector.shape_cast %38 : vector<1x256x256xbf16> to vector<256x256xbf16>
    %cst_47 = arith.constant dense<0.000000e+00> : vector<72x256xf32>
    %40 = tpu.matmul %37, %39, %cst_47 {dimension_numbers = #tpu.dot_dimension_numbers<[1], [0], [0], [1], [0, 0, 1, 1], [], []>} : vector<72x256xbf16>, vector<256x256xbf16>, vector<72x256xf32> -> vector<72x256xf32>
    %41 = arith.addf %36, %40 : vector<72x256xf32>
    %c9 = arith.constant 9 : index
    %c0_48 = arith.constant 0 : index
    %42 = vector.load %arg12[%c9, %c0_48] : memref<88x256xbf16, #tpu.memory_space<vmem>>, vector<72x256xbf16>
    %c2 = arith.constant 2 : index
    %c0_49 = arith.constant 0 : index
    %c0_50 = arith.constant 0 : index
    %43 = vector.load %arg5[%c2, %c0_49, %c0_50] : memref<3x256x256xbf16, #tpu.memory_space<vmem>>, vector<1x256x256xbf16>
    %44 = vector.shape_cast %43 : vector<1x256x256xbf16> to vector<256x256xbf16>
    %cst_51 = arith.constant dense<0.000000e+00> : vector<72x256xf32>
    %45 = tpu.matmul %42, %44, %cst_51 {dimension_numbers = #tpu.dot_dimension_numbers<[1], [0], [0], [1], [0, 0, 1, 1], [], []>} : vector<72x256xbf16>, vector<256x256xbf16>, vector<72x256xf32> -> vector<72x256xf32>
    %46 = arith.addf %41, %45 : vector<72x256xf32>
    %c0_52 = arith.constant 0 : index
    %c0_53 = arith.constant 0 : index
    %47 = vector.load %arg6[%c0_52, %c0_53] : memref<1x256xf32, #tpu.memory_space<vmem>>, vector<1x256xf32>
    %48 = vector.broadcast %47 : vector<1x256xf32> to vector<72x256xf32>
    %49 = arith.mulf %46, %48 : vector<72x256xf32>
    %c0_54 = arith.constant 0 : index
    %c0_55 = arith.constant 0 : index
    %50 = vector.load %arg7[%c0_54, %c0_55] : memref<1x256xf32, #tpu.memory_space<vmem>>, vector<1x256xf32>
    %51 = vector.broadcast %50 : vector<1x256xf32> to vector<72x256xf32>
    %52 = arith.addf %49, %51 : vector<72x256xf32>
    %cst_56 = arith.constant 0.000000e+00 : f32
    %53 = vector.broadcast %cst_56 : f32 to vector<72x256xf32>
    %54 = arith.maximumf %52, %53 : vector<72x256xf32>
    %55 = arith.truncf %54 : vector<72x256xf32> to vector<72x256xbf16>
    %c8_57 = arith.constant 8 : index
    %c0_58 = arith.constant 0 : index
    %56 = vector.load %arg13[%c8_57, %c0_58] : memref<88x256xbf16, #tpu.memory_space<vmem>>, vector<72x256xbf16>
    tpu.vector_store %arg13[%c8_57, %c0_58], %55 {strides = array<i32>} : memref<88x256xbf16, #tpu.memory_space<vmem>>, vector<72x256xbf16>,
    %c40_59 = arith.constant 40 : index
    %c0_60 = arith.constant 0 : index
    %57 = vector.load %arg13[%c40_59, %c0_60] : memref<88x256xbf16, #tpu.memory_space<vmem>>, vector<8x256xbf16>
    tpu.vector_store %arg13[%c40_59, %c0_60], %1 {strides = array<i32>} : memref<88x256xbf16, #tpu.memory_space<vmem>>, vector<8x256xbf16>,
    %cst_61 = arith.constant 0.000000e+00 : f32
    %58 = vector.broadcast %cst_61 : f32 to vector<72x256xf32>
    %c7_62 = arith.constant 7 : index
    %c0_63 = arith.constant 0 : index
    %59 = vector.load %arg13[%c7_62, %c0_63] : memref<88x256xbf16, #tpu.memory_space<vmem>>, vector<72x256xbf16>
    %c0_64 = arith.constant 0 : index
    %c0_65 = arith.constant 0 : index
    %c0_66 = arith.constant 0 : index
    %60 = vector.load %arg8[%c0_64, %c0_65, %c0_66] : memref<3x256x256xbf16, #tpu.memory_space<vmem>>, vector<1x256x256xbf16>
    %61 = vector.shape_cast %60 : vector<1x256x256xbf16> to vector<256x256xbf16>
    %cst_67 = arith.constant dense<0.000000e+00> : vector<72x256xf32>
    %62 = tpu.matmul %59, %61, %cst_67 {dimension_numbers = #tpu.dot_dimension_numbers<[1], [0], [0], [1], [0, 0, 1, 1], [], []>} : vector<72x256xbf16>, vector<256x256xbf16>, vector<72x256xf32> -> vector<72x256xf32>
    %63 = arith.addf %58, %62 : vector<72x256xf32>
    %c8_68 = arith.constant 8 : index
    %c0_69 = arith.constant 0 : index
    %64 = vector.load %arg13[%c8_68, %c0_69] : memref<88x256xbf16, #tpu.memory_space<vmem>>, vector<72x256xbf16>
    %c1_70 = arith.constant 1 : index
    %c0_71 = arith.constant 0 : index
    %c0_72 = arith.constant 0 : index
    %65 = vector.load %arg8[%c1_70, %c0_71, %c0_72] : memref<3x256x256xbf16, #tpu.memory_space<vmem>>, vector<1x256x256xbf16>
    %66 = vector.shape_cast %65 : vector<1x256x256xbf16> to vector<256x256xbf16>
    %cst_73 = arith.constant dense<0.000000e+00> : vector<72x256xf32>
    %67 = tpu.matmul %64, %66, %cst_73 {dimension_numbers = #tpu.dot_dimension_numbers<[1], [0], [0], [1], [0, 0, 1, 1], [], []>} : vector<72x256xbf16>, vector<256x256xbf16>, vector<72x256xf32> -> vector<72x256xf32>
    %68 = arith.addf %63, %67 : vector<72x256xf32>
    %c9_74 = arith.constant 9 : index
    %c0_75 = arith.constant 0 : index
    %69 = vector.load %arg13[%c9_74, %c0_75] : memref<88x256xbf16, #tpu.memory_space<vmem>>, vector<72x256xbf16>
    %c2_76 = arith.constant 2 : index
    %c0_77 = arith.constant 0 : index
    %c0_78 = arith.constant 0 : index
    %70 = vector.load %arg8[%c2_76, %c0_77, %c0_78] : memref<3x256x256xbf16, #tpu.memory_space<vmem>>, vector<1x256x256xbf16>
    %71 = vector.shape_cast %70 : vector<1x256x256xbf16> to vector<256x256xbf16>
    %cst_79 = arith.constant dense<0.000000e+00> : vector<72x256xf32>
    %72 = tpu.matmul %69, %71, %cst_79 {dimension_numbers = #tpu.dot_dimension_numbers<[1], [0], [0], [1], [0, 0, 1, 1], [], []>} : vector<72x256xbf16>, vector<256x256xbf16>, vector<72x256xf32> -> vector<72x256xf32>
    %73 = arith.addf %68, %72 : vector<72x256xf32>
    %c0_80 = arith.constant 0 : index
    %c0_81 = arith.constant 0 : index
    %74 = vector.load %arg9[%c0_80, %c0_81] : memref<1x256xf32, #tpu.memory_space<vmem>>, vector<1x256xf32>
    %75 = vector.broadcast %74 : vector<1x256xf32> to vector<72x256xf32>
    %76 = arith.mulf %73, %75 : vector<72x256xf32>
    %c0_82 = arith.constant 0 : index
    %c0_83 = arith.constant 0 : index
    %77 = vector.load %arg10[%c0_82, %c0_83] : memref<1x256xf32, #tpu.memory_space<vmem>>, vector<1x256xf32>
    %78 = vector.broadcast %77 : vector<1x256xf32> to vector<72x256xf32>
    %79 = arith.addf %76, %78 : vector<72x256xf32>
    %cst_84 = arith.constant 0.000000e+00 : f32
    %80 = vector.broadcast %cst_84 : f32 to vector<72x256xf32>
    %81 = arith.maximumf %79, %80 : vector<72x256xf32>
    %82 = vector.extract_strided_slice %81 {offsets = [0, 0], sizes = [32, 256], strides = [1, 1]} : vector<72x256xf32> to vector<32x256xf32>
    %c0_85 = arith.constant 0 : index
    %c0_86 = arith.constant 0 : index
    %c0_87 = arith.constant 0 : index
    %83 = vector.load %arg11[%c0_85, %c0_86, %c0_87] : memref<2x32x256xf32, #tpu.memory_space<vmem>>, vector<1x32x256xf32>
    %84 = vector.shape_cast %83 : vector<1x32x256xf32> to vector<32x256xf32>
    %85 = vector.shape_cast %82 : vector<32x256xf32> to vector<1x32x256xf32>
    tpu.vector_store %arg11[%c0_85, %c0_86, %c0_87], %85 {strides = array<i32>} : memref<2x32x256xf32, #tpu.memory_space<vmem>>, vector<1x32x256xf32>,
    %86 = vector.extract_strided_slice %81 {offsets = [40, 0], sizes = [32, 256], strides = [1, 1]} : vector<72x256xf32> to vector<32x256xf32>
    %c1_88 = arith.constant 1 : index
    %c0_89 = arith.constant 0 : index
    %c0_90 = arith.constant 0 : index
    %87 = vector.load %arg11[%c1_88, %c0_89, %c0_90] : memref<2x32x256xf32, #tpu.memory_space<vmem>>, vector<1x32x256xf32>
    %88 = vector.shape_cast %87 : vector<1x32x256xf32> to vector<32x256xf32>
    %89 = vector.shape_cast %86 : vector<32x256xf32> to vector<1x32x256xf32>
    tpu.vector_store %arg11[%c1_88, %c0_89, %c0_90], %89 {strides = array<i32>} : memref<2x32x256xf32, #tpu.memory_space<vmem>>, vector<1x32x256xf32>,
    return
  }
  func.func @transform_0(%arg0: i32) -> (i32, i32, i32) {
    %c0_i32 = arith.constant 0 : i32
    %c0_i32_0 = arith.constant 0 : i32
    %c0_i32_1 = arith.constant 0 : i32
    return %arg0, %c0_i32, %c0_i32_0 : i32, i32, i32
  }
  func.func @transform_1(%arg0: i32) -> (i32, i32, i32) {
    %c0_i32 = arith.constant 0 : i32
    %c0_i32_0 = arith.constant 0 : i32
    %c0_i32_1 = arith.constant 0 : i32
    return %arg0, %c0_i32, %c0_i32_0 : i32, i32, i32
  }
  func.func @transform_2(%arg0: i32) -> (i32, i32) {
    %c0_i32 = arith.constant 0 : i32
    %c0_i32_0 = arith.constant 0 : i32
    %c0_i32_1 = arith.constant 0 : i32
    return %c0_i32, %c0_i32_0 : i32, i32
  }
  func.func @transform_3(%arg0: i32) -> (i32, i32) {
    %c0_i32 = arith.constant 0 : i32
    %c0_i32_0 = arith.constant 0 : i32
    %c0_i32_1 = arith.constant 0 : i32
    return %c0_i32, %c0_i32_0 : i32, i32
  }
  func.func @transform_4(%arg0: i32) -> (i32, i32, i32) {
    %c0_i32 = arith.constant 0 : i32
    %c0_i32_0 = arith.constant 0 : i32
    %c0_i32_1 = arith.constant 0 : i32
    %c0_i32_2 = arith.constant 0 : i32
    return %c0_i32, %c0_i32_0, %c0_i32_1 : i32, i32, i32
  }
  func.func @transform_5(%arg0: i32) -> (i32, i32) {
    %c0_i32 = arith.constant 0 : i32
    %c0_i32_0 = arith.constant 0 : i32
    %c0_i32_1 = arith.constant 0 : i32
    return %c0_i32, %c0_i32_0 : i32, i32
  }
  func.func @transform_6(%arg0: i32) -> (i32, i32) {
    %c0_i32 = arith.constant 0 : i32
    %c0_i32_0 = arith.constant 0 : i32
    %c0_i32_1 = arith.constant 0 : i32
    return %c0_i32, %c0_i32_0 : i32, i32
  }
  func.func @transform_7(%arg0: i32) -> (i32, i32, i32) {
    %c0_i32 = arith.constant 0 : i32
    %c0_i32_0 = arith.constant 0 : i32
    %c0_i32_1 = arith.constant 0 : i32
    %c0_i32_2 = arith.constant 0 : i32
    return %c0_i32, %c0_i32_0, %c0_i32_1 : i32, i32, i32
  }
  func.func @transform_8(%arg0: i32) -> (i32, i32) {
    %c0_i32 = arith.constant 0 : i32
    %c0_i32_0 = arith.constant 0 : i32
    %c0_i32_1 = arith.constant 0 : i32
    return %c0_i32, %c0_i32_0 : i32, i32
  }
  func.func @transform_9(%arg0: i32) -> (i32, i32) {
    %c0_i32 = arith.constant 0 : i32
    %c0_i32_0 = arith.constant 0 : i32
    %c0_i32_1 = arith.constant 0 : i32
    return %c0_i32, %c0_i32_0 : i32, i32
  }
  func.func @transform_10(%arg0: i32) -> (i32, i32, i32) {
    %c0_i32 = arith.constant 0 : i32
    %c0_i32_0 = arith.constant 0 : i32
    %c0_i32_1 = arith.constant 0 : i32
    return %arg0, %c0_i32, %c0_i32_0 : i32, i32, i32
  }
}

</mosaic_0001>

<bundles_post_ra>
// kernel: _lambda_.1
= control target key start
LH: loop header
LB: loop body
LE: loop exit
PB: predicated region body
PF: predicated region fallthrough
CT: control target
= control target key end

     0   :  { %s4281_s13 = smov 0   ;;  %s5369_s0 = inlined_call_operand.vmem [shape: bf16[4,16,64], index: 0, kind: input, shape index: {}]   ;;  %s5370_s1 = inlined_call_operand.vmem [shape: bf16[4,32,128], index: 1, kind: input, shape index: {}]   ;;  %s5371_s2 = inlined_call_operand.vmem [shape: bf16[32,16], index: 2, kind: input, shape index: {}]   ;;  %s5372_s3 = inlined_call_operand.vmem [shape: bf16[64,128], index: 3, kind: input, shape index: {}]   ;;  %s5373_s4 = inlined_call_operand.vmem [shape: bf16[3,256,256], index: 4, kind: input, shape index: {}]   ;;  %s5374_s5 = inlined_call_operand.vmem [shape: f32[1,256], index: 5, kind: input, shape index: {}]   ;;  %s5375_s6 = inlined_call_operand.vmem [shape: f32[1,256], index: 6, kind: input, shape index: {}]   ;;  %s5376_s7 = inlined_call_operand.vmem [shape: bf16[3,256,256], index: 7, kind: input, shape index: {}]   ;;  %s5377_s8 = inlined_call_operand.vmem [shape: f32[1,256], index: 8, kind: input, shape index: {}]   ;;  %s5378_s9 = inlined_call_operand.vmem [shape: f32[1,256], index: 9, kind: input, shape index: {}]   ;;  %s5379_s10 = inlined_call_operand.vmem [shape: f32[4,32,256], index: 10, kind: output, shape index: {}]  }
   0x1 LB: > { %s3352_s14 = sadd.s32 4294967295, %s4221_s13   ;;  %p3356_p0 = scmp.ge.s32.totalorder %s4221_s13, 1  ;;  %s4221_s13 = sphi %s4281_s13, %s20_s13  }
   0x2   : > { %p326_p1 = scmp.lt.s32.totalorder %s4221_s13, 3 }
   0x4   : > { %p327_p2 = pnand %p3356_p0, %p326_p1 }
   0x5   : > { %s3357_s19 = sshll.u32 (!%p327_p2), %s3352_s14, 1 }
   0x6   : > { %330 = sbr.rel (%p327_p2) target bundleno = 1192 (0x4a8), region = 60  ;;  %p373_p3 = scmp.lt.s32.totalorder (!%p327_p2), %s3357_s19, 3 }
   0xb   : > { %v3882_v0 = vld [vmem:[%s5372_s3 + $0x18] sm:$0xff]   ;;  %v4223_v1 = vmov 0.0   ;;  %v3883_v2 = vld [vmem:[%s5372_s3 + $0x10] sm:$0xff]   ;;  %vm4224_vm0 = vmmov 0   ;;  %v3884_v3 = vld [vmem:[%s5372_s3 + $0x8] sm:$0xff]   ;;  %s5381_s19 = smov (!%p373_p3, %s3357_s19), 3 }
   0xc   : > { %3835 = vmatprep.subr.bf16.mxu0 %v4223_v1  ;;  %3843 = vmatprep.mubr.msk.bf16.mxu0 %vm4224_vm0, %v4223_v1  ;;  %s3799_s22 = sshll.u32 %s5381_s19, 3  ;;  %s3800_s23 = sshll.u32 %s5381_s19, 4  ;;  %v3885_v4 = vld [vmem:[%s5372_s3] sm:$0xff]   ;;  %vm438_vm1 = vcmask 523264   ;;  %vm498_vm2 = vcmask 130048   ;;  %v3888_v20 = vld [vmem:[%s5371_s2 + $0x8] sm:$0xff]  }
   0xd   : > { %3836 = vmatpush3.bf16.msra.mxu0 %v3882_v0  ;;  %s4306_s26 = scalar_lea.vmem %s5369_s0, %s3799_s22  ;;  %s384_s29 = scalar_lea.vmem %s5370_s1, %s3800_s23  ;;  %v3887_v14 = vld [vmem:[%s5371_s2] sm:$0xff]   ;;  %v3889_v21 = vld [vmem:[%s5372_s3 + $0x18] sm:$0xff]   ;;  %v3890_v22 = vld [vmem:[%s5372_s3 + $0x10] sm:$0xff]   ;;  %v4225_v52 = vmov 0   ;;  %vm1141_vm3 = vsmask.f32 4352 }
   0xe   : > { %3837 = vmatprep.subr.bf16.mxu0 %v4223_v1  ;;  %v574_v5 = vld [vmem:[%s384_s29] sm:$0xf]  ;;  %v575_v6 = vld [vmem:[%s384_s29 + $0x4] sm:$0xf]  ;;  %v576_v7 = vld [vmem:[%s384_s29 + $0x8] sm:$0xf]  ;;  %3849 = vmatprep.mubr.msk.bf16.mxu1 %vm498_vm2, %v3887_v14 }
   0xf   : > { %v3886_v8 = vld [vmem:[%s4306_s26] sm:$0xff]   ;;  %v577_v9 = vld [vmem:[%s384_s29 + $0xc] sm:$0xf]  ;;  %578 = vst [vmem:[#allocation2 + $0xc] sm:$0xf] %v574_v5  ;;  %394 = vst [vmem:[#allocation2] sm:$0xff] %v4225_v52 }
  0x10   : > { %579 = vst [vmem:[#allocation2 + $0x14] sm:$0xf] %v575_v6  ;;  %580 = vst [vmem:[#allocation2 + $0x1c] sm:$0xf] %v576_v7  ;;  %v3396_v10 = vld [vmem:[%s384_s29 + $0x10] sm:$0xf] }
  0x11   : > { %3838 = vmatpush3.bf16.msra.mxu0 %v3883_v2  ;;  %v3397_v11 = vld [vmem:[%s384_s29 + $0x14] sm:$0xf]  ;;  %581 = vst [vmem:[#allocation2 + $0x24] sm:$0xf] %v577_v9  ;;  %v3398_v12 = vld [vmem:[%s384_s29 + $0x18] sm:$0xf] }
  0x12   : > { %3839 = vmatprep.subr.bf16.mxu0 %v4223_v1  ;;  %v3399_v13 = vld [vmem:[%s384_s29 + $0x1c] sm:$0xf]  ;;  %761 = vst [vmem:[#allocation2 + $0x34] sm:$0xf] %v3396_v10  ;;  %762 = vst [vmem:[#allocation2 + $0x3c] sm:$0xf] %v3397_v11 }
  0x13   : > { %763 = vst [vmem:[#allocation2 + $0x44] sm:$0xf] %v3398_v12  ;;  %764 = vst [vmem:[#allocation2 + $0x4c] sm:$0xf] %v3399_v13  ;;  %v3891_v23 = vld [vmem:[%s5372_s3 + $0x8] sm:$0xff]   ;;  %v3892_v24 = vld [vmem:[%s5372_s3] sm:$0xff]  }
  0x14   : > { %v3896_v25 = vld [vmem:[%s5373_s4 + $0x174] ss:$8 sps:$4 sm:$0xff]   ;;  %v3893_v26 = vld [vmem:[%s4306_s26 + $0x8] sm:$0xff]   ;;  %v3894_v27 = vld [vmem:[%s5373_s4 + $0x170] ss:$8 sps:$4 sm:$0xff]   ;;  %395 = vst [vmem:[#allocation3 + $0x28] sm:$0xff] %v4225_v52 }
  0x15   : > { %3840 = vmatpush3.bf16.msra.mxu0 %v3884_v3  ;;  %v3899_v28 = vld [vmem:[%s5373_s4 + $0x164] ss:$8 sps:$4 sm:$0xff]   ;;  %v3897_v29 = vld [vmem:[%s5373_s4 + $0x160] ss:$8 sps:$4 sm:$0xff]   ;;  %v3902_v30 = vld [vmem:[%s5373_s4 + $0x154] ss:$8 sps:$4 sm:$0xff]  }
  0x16   : > { %3841 = vmatprep.subr.bf16.mxu0 %v4223_v1  ;;  %v3900_v31 = vld [vmem:[%s5373_s4 + $0x150] ss:$8 sps:$4 sm:$0xff]   ;;  %v3905_v32 = vld [vmem:[%s5373_s4 + $0x144] ss:$8 sps:$4 sm:$0xff]   ;;  %v3903_v33 = vld [vmem:[%s5373_s4 + $0x140] ss:$8 sps:$4 sm:$0xff]  }
  0x17   : > { %v3908_v34 = vld [vmem:[%s5373_s4 + $0x134] ss:$8 sps:$4 sm:$0xff]   ;;  %v3906_v35 = vld [vmem:[%s5373_s4 + $0x130] ss:$8 sps:$4 sm:$0xff]   ;;  %v3911_v36 = vld [vmem:[%s5373_s4 + $0x124] ss:$8 sps:$4 sm:$0xff]  }
  0x18   : > { %v3909_v37 = vld [vmem:[%s5373_s4 + $0x120] ss:$8 sps:$4 sm:$0xff]   ;;  %v3914_v38 = vld [vmem:[%s5373_s4 + $0x114] ss:$8 sps:$4 sm:$0xff]   ;;  %v3912_v39 = vld [vmem:[%s5373_s4 + $0x110] ss:$8 sps:$4 sm:$0xff]  }
  0x19   : > { %3842 = vmatpush3.bf16.msra.mxu0 %v3885_v4  ;;  %v3917_v40 = vld [vmem:[%s5373_s4 + $0x104] ss:$8 sps:$4 sm:$0xff]   ;;  %v3915_v41 = vld [vmem:[%s5373_s4 + $0x100] ss:$8 sps:$4 sm:$0xff]   ;;  %v3920_v42 = vld [vmem:[%s5373_s4 + $0x1f4] ss:$8 sps:$4 sm:$0xff]  }
  0x1a   : > { %v3918_v43 = vld [vmem:[%s5373_s4 + $0x1f0] ss:$8 sps:$4 sm:$0xff]   ;;  %v3923_v44 = vld [vmem:[%s5373_s4 + $0x1e4] ss:$8 sps:$4 sm:$0xff]   ;;  %v3921_v45 = vld [vmem:[%s5373_s4 + $0x1e0] ss:$8 sps:$4 sm:$0xff]  }
  0x1b   : > { %v3926_v46 = vld [vmem:[%s5373_s4 + $0x1d4] ss:$8 sps:$4 sm:$0xff]   ;;  %v3924_v47 = vld [vmem:[%s5373_s4 + $0x1d0] ss:$8 sps:$4 sm:$0xff]   ;;  %v3929_v48 = vld [vmem:[%s5373_s4 + $0x1c4] ss:$8 sps:$4 sm:$0xff]  }
  0x1c   : > { %3844 = vmatmul.mubr.msk.bf16.vlgmr.msra.gmra.mxu0 %vm438_vm1, %v3886_v8  ;;  %v3927_v49 = vld [vmem:[%s5373_s4 + $0x1c0] ss:$8 sps:$4 sm:$0xff]   ;;  %v3932_v50 = vld [vmem:[%s5373_s4 + $0x1b4] ss:$8 sps:$4 sm:$0xff]   ;;  %v3930_v51 = vld [vmem:[%s5373_s4 + $0x1b0] ss:$8 sps:$4 sm:$0xff]  }
  0x1d   : > { %396 = vst [vmem:[#allocation2 + $0x50] sm:$0xff] %v4225_v52  ;;  %397 = vst [vmem:[#allocation3] sm:$0xff] %v4225_v52  ;;  %v3935_v53 = vld [vmem:[%s5373_s4 + $0x1a4] ss:$8 sps:$4 sm:$0xff]   ;;  %v3933_v54 = vld [vmem:[%s5373_s4 + $0x1a0] ss:$8 sps:$4 sm:$0xff]  }
  0x1e   : > { %v3936_v55 = vld [vmem:[%s5373_s4 + $0x190] ss:$8 sps:$4 sm:$0xff]   ;;  %v3938_v56 = vld [vmem:[%s5373_s4 + $0x194] ss:$8 sps:$4 sm:$0xff]   ;;  %v3941_v57 = vld [vmem:[%s5373_s4 + $0x184] ss:$8 sps:$4 sm:$0xff]  }
  0x1f   : > { %v3939_v58 = vld [vmem:[%s5373_s4 + $0x180] ss:$8 sps:$4 sm:$0xff]   ;;  %v4000_v60 = vld [vmem:[%s5373_s4 + $0x274] ss:$8 sps:$4 sm:$0xff]   ;;  %vm1564_vm4 = vsmask.f32 7424 }
  0x20   : > { %v3946_v59 = vld [vmem:[%s5371_s2] sm:$0xff]   ;;  %s3801_s27 = sshll.u32 %s5381_s19, 6 }
  0x21   : > { %3867 = vmatprep.mubr.msk.bf16.mxu0 %vm498_vm2, %v3946_v59  ;;  %v765_v5 = vld [vmem:[#allocation2] sm:$0x88]  ;;  %s5301_s30 = scalar_lea.vmem %s5379_s10, %s3801_s27 }
  0x22   : > { %v4009_v59 = vld [vmem:[%s5373_s4 + $0x244] ss:$8 sps:$4 sm:$0xff]  }
  0xdc   : > { %v476_v15 = vpop.f32.mrf.mxu0 }
  0xde   : > { %v3845_v16 = vpop.f32.mrf.mxu0 }
  0xe0   : > { %v479_v17 = vpop.f32.mrf.mxu0 }
  0xe1   : > { %v487_v18 = vpack.c.bf16 %v479_v17, %v476_v15 }
  0xe2   : > { %v3846_v19 = vpop.f32.mrf.mxu0 }
  0xe3   : > { %3847 = vmatprep.subr.bf16.mxu1 %v487_v18  ;;  %v3998_v19 = vld [vmem:[%s5373_s4 + $0x270] ss:$8 sps:$4 sm:$0xff]  }
  0xe4   : > { %3848 = vmatpush3.bf16.msra.mxu1 %v487_v18 }
  0xe5   : > { %3853 = vmatprep.subr.bf16.mxu1 %v4223_v1 }
  0xe7   : > { %3850 = vmatmul.mubr.msk.bf16.vlgmr.msra.gmra.mxu1 %vm498_vm2, %v3888_v20 }
  0xe8   : > { %3854 = vmatpush3.bf16.msra.mxu1 %v3889_v21  ;;  %3861 = vmatprep.mubr.msk.bf16.mxu1 %vm4224_vm0, %v4223_v1 }
  0xe9   : > { %3855 = vmatprep.subr.bf16.mxu1 %v4223_v1 }
  0xec   : > { %3856 = vmatpush3.bf16.msra.mxu1 %v3890_v22 }
  0xed   : > { %3857 = vmatprep.subr.bf16.mxu1 %v4223_v1 }
  0xf0   : > { %3858 = vmatpush3.bf16.msra.mxu1 %v3891_v23 }
  0xf1   : > { %3859 = vmatprep.subr.bf16.mxu1 %v4223_v1 }
  0xf4   : > { %3860 = vmatpush3.bf16.msra.mxu1 %v3892_v24  ;;  %v4003_v24 = vld [vmem:[%s5373_s4 + $0x264] ss:$8 sps:$4 sm:$0xff]  }
  0xf5   : > { %1047 = vmatprep.subr.bf16.mxu1 %v3896_v25 }
  0xf7   : > { %3862 = vmatmul.mubr.msk.bf16.vlgmr.msra.gmra.mxu1 %vm438_vm1, %v3893_v26 }
  0xf8   : > { %1048 = vmatpush1.bf16.msra.mxu1 %v3894_v27 }
  0xf9   : > { %1049 = vmatprep.subr.bf16.mxu1 %v3899_v28 }
  0xfc   : > { %1050 = vmatpush1.bf16.msra.mxu1 %v3897_v29 }
  0xfd   : > { %1051 = vmatprep.subr.bf16.mxu1 %v3902_v30  ;;  %v3950_v30 = vld [vmem:[%s5373_s4 + $0x74] ss:$8 sps:$4 sm:$0xff]  }
 0x100   : > { %1052 = vmatpush1.bf16.msra.mxu1 %v3900_v31 }
 0x101   : > { %1053 = vmatprep.subr.bf16.mxu1 %v3905_v32 }
 0x104   : > { %1054 = vmatpush1.bf16.msra.mxu1 %v3903_v33 }
 0x105   : > { %1055 = vmatprep.subr.bf16.mxu1 %v3908_v34 }
 0x108   : > { %1056 = vmatpush1.bf16.msra.mxu1 %v3906_v35 }
 0x109   : > { %1057 = vmatprep.subr.bf16.mxu1 %v3911_v36 }
 0x10c   : > { %1058 = vmatpush1.bf16.msra.mxu1 %v3909_v37  ;;  %v4001_v37 = vld [vmem:[%s5373_s4 + $0x260] ss:$8 sps:$4 sm:$0xff]  }
 0x10d   : > { %1059 = vmatprep.subr.bf16.mxu1 %v3914_v38 }
 0x110   : > { %1060 = vmatpush1.bf16.msra.mxu1 %v3912_v39 }
 0x111   : > { %1061 = vmatprep.subr.bf16.mxu1 %v3917_v40 }
 0x114   : > { %1062 = vmatpush1.bf16.msra.mxu1 %v3915_v41 }
 0x115   : > { %1063 = vmatprep.subr.bf16.mxu1 %v3920_v42  ;;  %v4006_v42 = vld [vmem:[%s5373_s4 + $0x254] ss:$8 sps:$4 sm:$0xff]  }
 0x118   : > { %1064 = vmatpush2.bf16.msra.mxu1 %v3918_v43  ;;  %v3947_v43 = vld [vmem:[%s5371_s2 + $0x8] sm:$0xff]  }
 0x119   : > { %1065 = vmatprep.subr.bf16.mxu1 %v3923_v44 }
 0x11c   : > { %1066 = vmatpush2.bf16.msra.mxu1 %v3921_v45 }
 0x11d   : > { %1067 = vmatprep.subr.bf16.mxu1 %v3926_v46  ;;  %v3948_v46 = vld [vmem:[%s5373_s4 + $0x70] ss:$8 sps:$4 sm:$0xff]  }
 0x120   : > { %1068 = vmatpush2.bf16.msra.mxu1 %v3924_v47 }
 0x121   : > { %1069 = vmatprep.subr.bf16.mxu1 %v3929_v48 }
 0x124   : > { %1070 = vmatpush2.bf16.msra.mxu1 %v3927_v49 }
 0x125   : > { %1071 = vmatprep.subr.bf16.mxu1 %v3932_v50 }
 0x128   : > { %1072 = vmatpush2.bf16.msra.mxu1 %v3930_v51  ;;  %v3955_v51 = vld [vmem:[%s5373_s4 + $0x64] ss:$8 sps:$4 sm:$0xff]  }
 0x129   : > { %1073 = vmatprep.subr.bf16.mxu1 %v3935_v53 }
 0x12c   : > { %1074 = vmatpush2.bf16.msra.mxu1 %v3933_v54 }
 0x12d   : > { %1075 = vmatprep.subr.bf16.mxu1 %v3938_v56 }
 0x130   : > { %1076 = vmatpush2.bf16.msra.mxu1 %v3936_v55 }
 0x131   : > { %1077 = vmatprep.subr.bf16.mxu1 %v3941_v57  ;;  %v4004_v57 = vld [vmem:[%s5373_s4 + $0x250] ss:$8 sps:$4 sm:$0xff]  }
 0x134   : > { %1078 = vmatpush2.bf16.msra.mxu1 %v3939_v58 }
 0x135   : > { %1813 = vmatprep.subr.bf16.mxu1 %v4000_v60 }
 0x1a7   : > { %v3851_v61 = vpop.f32.mrf.mxu1 }
 0x1a8   : > { %v3804_v62 = vpack.c.bf16 %v3851_v61, %v3851_v61 }
 0x1a9   : > { %v539_v63 = vpop.f32.mrf.mxu1 }
 0x1aa   : > { %572 = vst [vmem:[#allocation2 + $0x18] sm:$0xf] %v3804_v62  ;;  %v3802_v0 = vpack.c.bf16 %v539_v63, %v539_v63 }
 0x1ab   : > { %v3852_v1 = vpop.f32.mrf.mxu1 }
 0x1ac   : > { %570 = vst [vmem:[#allocation2 + $0x8] sm:$0xf] %v3802_v0  ;;  %v3805_v2 = vpack.c.bf16 %v3852_v1, %v3852_v1  ;;  %v3953_v0 = vld [vmem:[%s5373_s4 + $0x60] ss:$8 sps:$4 sm:$0xff]  }
 0x1ad   : > { %v542_v3 = vpop.f32.mrf.mxu1 }
 0x1ae   : > { %573 = vst [vmem:[#allocation2 + $0x20] sm:$0xf] %v3805_v2  ;;  %v3803_v4 = vpack.c.bf16 %v542_v3, %v542_v3  ;;  %v3958_v3 = vld [vmem:[%s5373_s4 + $0x54] ss:$8 sps:$4 sm:$0xff]  }
 0x1b0   : > { %571 = vst [vmem:[#allocation2 + $0x10] sm:$0xf] %v3803_v4 }
 0x1b1   : > { %v768_v12 = vld [vmem:[#allocation2 + $0x18] sm:$0xff] }
 0x1b3   : > { %v766_v6 = vld [vmem:[#allocation2 + $0x8] sm:$0xff] }
 0x1b4   : > { %v3474_v7 = vcombine.low %v765_v5, %v766_v6  ;;  %v3475_v8 = vcombine.high %v765_v5, %v766_v6  ;;  %v4007_v5 = vld [vmem:[%s5373_s4 + $0x240] ss:$8 sps:$4 sm:$0xff]  }
 0x1b5   : > { %v4446_v9 = vld [vmem:[#allocation2 + $0x20] sm:$0xff] }
 0x1b6   : > { %v1143_v13 = vshrl.u32 %v3474_v7, 16  ;;  %v1146_v14 = vshll.u32 %v3474_v7, 16  ;;  %v4454_v21 = vcombine.high %v768_v12, %v4446_v9  ;;  %v1160_v22 = vshrl.u32 %v3475_v8, 16 }
 0x1b7   : > { %v659_v10 = vpop.f32.mrf.mxu1  ;;  %v767_v11 = vld [vmem:[#allocation2 + $0x10] sm:$0xff]  ;;  %v1163_v23 = vshll.u32 %v3475_v8, 16  ;;  %v4474_v44 = vcombine.low %v768_v12, %v4446_v9 }
 0x1b8   : > { %v3433_v15 = vcombine.high %v766_v6, %v767_v11  ;;  %v4448_v16 = vcombine.low %v766_v6, %v767_v11  ;;  %v3476_v17 = vcombine.low %v767_v11, %v768_v12  ;;  %v3477_v18 = vcombine.high %v767_v11, %v768_v12  ;;  %v4012_v8 = vld [vmem:[%s5373_s4 + $0x234] ss:$8 sps:$4 sm:$0xff]   ;;  %v3961_v12 = vld [vmem:[%s5373_s4 + $0x44] ss:$8 sps:$4 sm:$0xff]  }
 0x1b9   : > { %v3863_v20 = vpop.f32.mrf.mxu1  ;;  %v1145_v31 = vrot.slane %v1143_v13, 3  ;;  %v1148_v32 = vrot.slane %v1146_v14, 4  ;;  %v1162_v39 = vrot.slane %v1160_v22, 3  ;;  %v1165_v40 = vrot.slane %v1163_v23, 4  ;;  %v4010_v13 = vld [vmem:[%s5373_s4 + $0x230] ss:$8 sps:$4 sm:$0xff]  }
 0x1ba   : > { %1079 = vmatprep.mubr.bf16.mxu1 %v3433_v15  ;;  %v1168_v25 = vshrl.u32 %v3477_v18, 16  ;;  %v1171_v26 = vshll.u32 %v3477_v18, 16  ;;  %v1151_v27 = vshrl.u32 %v3476_v17, 16  ;;  %v1154_v28 = vshll.u32 %v3476_v17, 16  ;;  %v3959_v14 = vld [vmem:[%s5373_s4 + $0x40] ss:$8 sps:$4 sm:$0xff]  }
 0x1bb   : > { %v662_v29 = vpop.f32.mrf.mxu1  ;;  %1080 = vmatmul.mubr.bf16.vlgmr.msra.gmra.mxu1 %v4448_v16  ;;  %v1580_v45 = vshll.u32 %v3433_v15, 16  ;;  %v1149_v48 = vor.u32 %v1148_v32, %v1145_v31  ;;  %v1585_v50 = vshll.u32 %v4454_v21, 16  ;;  %v1578_v53 = vshrl.u32 %v3433_v15, 16  ;;  %v3964_v15 = vld [vmem:[%s5373_s4 + $0x34] ss:$8 sps:$4 sm:$0xff]  }
 0x1bc   : > { %v670_v33 = vpack.c.bf16 %v662_v29, %v659_v10  ;;  %1089 = vmatprep.mubr.bf16.mxu1 %v4454_v21  ;;  %v1170_v34 = vrot.slane %v1168_v25, 3  ;;  %v1173_v35 = vrot.slane %v1171_v26, 4  ;;  %v1153_v36 = vrot.slane %v1151_v27, 3  ;;  %1814 = vmatpush1.bf16.msra.mxu1 %v3998_v19  ;;  %v3956_v10 = vld [vmem:[%s5373_s4 + $0x50] ss:$8 sps:$4 sm:$0xff]  }
 0x1bd   : > { %v3864_v38 = vpop.f32.mrf.mxu1  ;;  %v1156_v41 = vrot.slane %v1154_v28, 4  ;;  %1815 = vmatprep.subr.bf16.mxu1 %v4003_v24  ;;  %v1582_v54 = vrot.slane %v1580_v45, 1  ;;  %v1166_v55 = vor.u32 %v1165_v40, %v1162_v39  ;;  %v1568_v58 = vshll.u32 %v4448_v16, 16  ;;  %v3967_v17 = vld [vmem:[%s5373_s4 + $0x24] ss:$8 sps:$4 sm:$0xff]  }
 0x1be   : > { %3865 = vmatprep.subr.bf16.mxu0 %v670_v33  ;;  %v4479_v47 = vor.u32 %v1173_v35, %v1170_v34  ;;  %v4499_v61 = vrot.slane %v1585_v50, 1  ;;  %v1573_v62 = vshll.u32 %v4474_v44, 16  ;;  %v1566_v1 = vshrl.u32 %v4448_v16, 16  ;;  %v3962_v16 = vld [vmem:[%s5373_s4 + $0x30] ss:$8 sps:$4 sm:$0xff]  }
 0x1bf   : > { %3866 = vmatpush3.bf16.msra.mxu0 %v670_v33  ;;  %v4481_v49 = vor.u32 %v1156_v41, %v1153_v36  ;;  %v1583_v60 = vor.u32 %v1582_v54, %v1578_v53  ;;  %v1570_v2 = vrot.slane %v1568_v58, 1  ;;  %v3965_v18 = vld [vmem:[%s5373_s4 + $0x20] ss:$8 sps:$4 sm:$0xff]   ;;  %v3970_v19 = vld [vmem:[%s5373_s4 + $0x14] ss:$8 sps:$4 sm:$0xff]  }
 0x1c0   : > { %1400 = vmatprep.subr.bf16.mxu0 %v3950_v30  ;;  %1816 = vmatpush1.bf16.msra.mxu1 %v4001_v37  ;;  %v1175_v63 = vsel %vm1141_vm3, %v1166_v55, %v4479_v47  ;;  %v4519_v7 = vrot.slane %v1573_v62, 1  ;;  %v3968_v20 = vld [vmem:[%s5373_s4 + $0x10] ss:$8 sps:$4 sm:$0xff]   ;;  %v3973_v22 = vld [vmem:[%s5373_s4 + $0x4] ss:$8 sps:$4 sm:$0xff]   ;;  %v3479_v37 = vcombine.high %v4446_v9, %v4225_v52 }
 0x1c1   : > { %v4489_v56 = vsel %vm1141_vm3, %v1149_v48, %v4481_v49  ;;  %1817 = vmatprep.subr.bf16.mxu1 %v4006_v42  ;;  %v4514_v4 = vsel %vm1564_vm4, %v1583_v60, %v4499_v61  ;;  %v1571_v6 = vor.u32 %v1570_v2, %v1566_v1  ;;  %v3971_v23 = vld [vmem:[%s5373_s4] ss:$8 sps:$4 sm:$0xff]   ;;  %v3976_v24 = vld [vmem:[%s5373_s4 + $0xf4] ss:$8 sps:$4 sm:$0xff]   ;;  %v3974_v25 = vld [vmem:[%s5373_s4 + $0xf0] ss:$8 sps:$4 sm:$0xff]  }
 0x1c2   : > { %3868 = vmatmul.mubr.msk.bf16.vlgmr.msra.gmra.mxu0 %vm498_vm2, %v3947_v43  ;;  %v3979_v26 = vld [vmem:[%s5373_s4 + $0xe4] ss:$8 sps:$4 sm:$0xff]   ;;  %v3977_v27 = vld [vmem:[%s5373_s4 + $0xe0] ss:$8 sps:$4 sm:$0xff]   ;;  %v3982_v28 = vld [vmem:[%s5373_s4 + $0xd4] ss:$8 sps:$4 sm:$0xff]   ;;  %v3478_v43 = vcombine.low %v4446_v9, %v4225_v52 }
 0x1c3   : > { %1090 = vmatmul.mubr.bf16.gmra.mxu1 %v4474_v44  ;;  %1401 = vmatpush1.bf16.msra.mxu0 %v3948_v46  ;;  %v4529_v11 = vsel %vm1564_vm4, %v1571_v6, %v4519_v7  ;;  %v3980_v29 = vld [vmem:[%s5373_s4 + $0xd0] ss:$8 sps:$4 sm:$0xff]   ;;  %v3985_v30 = vld [vmem:[%s5373_s4 + $0xc4] ss:$8 sps:$4 sm:$0xff]   ;;  %v3983_v31 = vld [vmem:[%s5373_s4 + $0xc0] ss:$8 sps:$4 sm:$0xff]  }
 0x1c4   : > { %1432 = vmatprep.mubr.bf16.mxu0 %v1175_v63  ;;  %1402 = vmatprep.subr.bf16.mxu0 %v3955_v51  ;;  %v3988_v32 = vld [vmem:[%s5373_s4 + $0xb4] ss:$8 sps:$4 sm:$0xff]   ;;  %v3986_v33 = vld [vmem:[%s5373_s4 + $0xb0] ss:$8 sps:$4 sm:$0xff]   ;;  %v3991_v34 = vld [vmem:[%s5373_s4 + $0xa4] ss:$8 sps:$4 sm:$0xff]  }
 0x1c5   : > { %1818 = vmatpush1.bf16.msra.mxu1 %v4004_v57  ;;  %v3989_v35 = vld [vmem:[%s5373_s4 + $0xa0] ss:$8 sps:$4 sm:$0xff]   ;;  %v3994_v36 = vld [vmem:[%s5373_s4 + $0x94] ss:$8 sps:$4 sm:$0xff]   ;;  %v3992_v38 = vld [vmem:[%s5373_s4 + $0x90] ss:$8 sps:$4 sm:$0xff]  }
 0x1c6   : > { %1819 = vmatprep.subr.bf16.mxu1 %v4009_v59  ;;  %v3997_v39 = vld [vmem:[%s5373_s4 + $0x84] ss:$8 sps:$4 sm:$0xff]   ;;  %v1186_v40 = vshrl.u32 %v3479_v37, 16  ;;  %v1189_v41 = vshll.u32 %v3479_v37, 16  ;;  %v3995_v42 = vld [vmem:[%s5373_s4 + $0x80] ss:$8 sps:$4 sm:$0xff]  }
 0x1c7   : > { %1403 = vmatpush1.bf16.msra.mxu0 %v3953_v0  ;;  %v4013_v48 = vld [vmem:[%s5373_s4 + $0x220] ss:$8 sps:$4 sm:$0xff]   ;;  %v4015_v50 = vld [vmem:[%s5373_s4 + $0x224] ss:$8 sps:$4 sm:$0xff]   ;;  %v1177_v51 = vshrl.u32 %v3478_v43, 16  ;;  %v1180_v53 = vshll.u32 %v3478_v43, 16 }
 0x1c8   : > { %1404 = vmatprep.subr.bf16.mxu0 %v3958_v3  ;;  %v1188_v45 = vrot.slane %v1186_v40, 3  ;;  %v1191_v46 = vrot.slane %v1189_v41, 4  ;;  %v4016_v58 = vld [vmem:[%s5373_s4 + $0x210] ss:$8 sps:$4 sm:$0xff]   ;;  %v4018_v59 = vld [vmem:[%s5373_s4 + $0x214] ss:$8 sps:$4 sm:$0xff]  }
 0x1c9   : > { %1820 = vmatpush1.bf16.msra.mxu1 %v4007_v5  ;;  %v1179_v55 = vrot.slane %v1177_v51, 3  ;;  %v1182_v57 = vrot.slane %v1180_v53, 4  ;;  %v4021_v62 = vld [vmem:[%s5373_s4 + $0x204] ss:$8 sps:$4 sm:$0xff]   ;;  %v4024_v63 = vld [vmem:[%s5373_s4 + $0x2f4] ss:$8 sps:$4 sm:$0xff]  }
 0x1ca   : > { %1821 = vmatprep.subr.bf16.mxu1 %v4012_v8  ;;  %v4622_v54 = vor.u32 %v1191_v46, %v1188_v45  ;;  %v4022_v0 = vld [vmem:[%s5373_s4 + $0x2f0] ss:$8 sps:$4 sm:$0xff]   ;;  %v4025_v1 = vld [vmem:[%s5373_s4 + $0x2e0] ss:$8 sps:$4 sm:$0xff]   ;;  %v4030_v2 = vld [vmem:[%s5373_s4 + $0x2d4] ss:$8 sps:$4 sm:$0xff]  }
 0x1cb   : > { %1405 = vmatpush1.bf16.msra.mxu0 %v3956_v10  ;;  %v4634_v60 = vor.u32 %v1182_v57, %v1179_v55  ;;  %v4028_v3 = vld [vmem:[%s5373_s4 + $0x2d0] ss:$8 sps:$4 sm:$0xff]   ;;  %v4034_v5 = vld [vmem:[%s5373_s4 + $0x2c4] ss:$8 sps:$4 sm:$0xff]   ;;  %v4032_v6 = vld [vmem:[%s5373_s4 + $0x2c0] ss:$8 sps:$4 sm:$0xff]  }
 0x1cc   : > { %1406 = vmatprep.subr.bf16.mxu0 %v3961_v12  ;;  %v1193_v9 = vsel %vm1141_vm3, %v4479_v47, %v4622_v54  ;;  %v4019_v47 = vld [vmem:[%s5373_s4 + $0x200] ss:$8 sps:$4 sm:$0xff]   ;;  %v4038_v8 = vld [vmem:[%s5373_s4 + $0x2b4] ss:$8 sps:$4 sm:$0xff]   ;;  %v4036_v10 = vld [vmem:[%s5373_s4 + $0x2b0] ss:$8 sps:$4 sm:$0xff]  }
 0x1cd   : > { %1822 = vmatpush1.bf16.msra.mxu1 %v4010_v13  ;;  %v4045_v12 = vld [vmem:[%s5373_s4 + $0x2a4] ss:$8 sps:$4 sm:$0xff]   ;;  %v4043_v13 = vld [vmem:[%s5373_s4 + $0x2a0] ss:$8 sps:$4 sm:$0xff]  }
 0x1ce   : > { %1823 = vmatprep.subr.bf16.mxu1 %v4015_v50 }
 0x1cf   : > { %1407 = vmatpush1.bf16.msra.mxu0 %v3959_v14  ;;  %v4049_v14 = vld [vmem:[%s5373_s4 + $0x294] ss:$8 sps:$4 sm:$0xff]  }
 0x1d0   : > { %1408 = vmatprep.subr.bf16.mxu0 %v3964_v15  ;;  %v4047_v15 = vld [vmem:[%s5373_s4 + $0x290] ss:$8 sps:$4 sm:$0xff]  }
 0x1d1   : > { %1824 = vmatpush1.bf16.msra.mxu1 %v4013_v48 }
 0x1d2   : > { %1825 = vmatprep.subr.bf16.mxu1 %v4018_v59 }
 0x1d3   : > { %1409 = vmatpush1.bf16.msra.mxu0 %v3962_v16  ;;  %v4053_v16 = vld [vmem:[%s5373_s4 + $0x284] ss:$8 sps:$4 sm:$0xff]  }
 0x1d4   : > { %1410 = vmatprep.subr.bf16.mxu0 %v3967_v17  ;;  %v4051_v17 = vld [vmem:[%s5373_s4 + $0x280] ss:$8 sps:$4 sm:$0xff]  }
 0x1d5   : > { %1826 = vmatpush1.bf16.msra.mxu1 %v4016_v58 }
 0x1d6   : > { %1827 = vmatprep.subr.bf16.mxu1 %v4021_v62 }
 0x1d7   : > { %1411 = vmatpush1.bf16.msra.mxu0 %v3965_v18  ;;  %v4056_v18 = vld [vmem:[%s5376_s7 + $0x170] ss:$8 sps:$4 sm:$0xff]  }
 0x1d8   : > { %1412 = vmatprep.subr.bf16.mxu0 %v3970_v19  ;;  %v4058_v19 = vld [vmem:[%s5376_s7 + $0x174] ss:$8 sps:$4 sm:$0xff]  }
 0x1d9   : > { %1828 = vmatpush1.bf16.msra.mxu1 %v4019_v47 }
 0x1da   : > { %1829 = vmatprep.subr.bf16.mxu1 %v4024_v63 }
 0x1db   : > { %1413 = vmatpush1.bf16.msra.mxu0 %v3968_v20  ;;  %v4061_v20 = vld [vmem:[%s5376_s7 + $0x164] ss:$8 sps:$4 sm:$0xff]  }
 0x1dc   : > { %1414 = vmatprep.subr.bf16.mxu0 %v3973_v22  ;;  %v4059_v22 = vld [vmem:[%s5376_s7 + $0x160] ss:$8 sps:$4 sm:$0xff]  }
 0x1dd   : > { %1830 = vmatpush2.bf16.msra.mxu1 %v4022_v0 }
 0x1df   : > { %1415 = vmatpush1.bf16.msra.mxu0 %v3971_v23  ;;  %v4070_v23 = vld [vmem:[%s5376_s7 + $0x74] ss:$8 sps:$4 sm:$0xff]  }
 0x1e0   : > { %1416 = vmatprep.subr.bf16.mxu0 %v3976_v24  ;;  %v4064_v24 = vld [vmem:[%s5376_s7 + $0x154] ss:$8 sps:$4 sm:$0xff]  }
 0x1e3   : > { %1417 = vmatpush2.bf16.msra.mxu0 %v3974_v25  ;;  %v4062_v25 = vld [vmem:[%s5376_s7 + $0x150] ss:$8 sps:$4 sm:$0xff]  }
 0x1e4   : > { %1418 = vmatprep.subr.bf16.mxu0 %v3979_v26  ;;  %v4067_v26 = vld [vmem:[%s5376_s7 + $0x144] ss:$8 sps:$4 sm:$0xff]  }
 0x1e7   : > { %1419 = vmatpush2.bf16.msra.mxu0 %v3977_v27  ;;  %v4065_v27 = vld [vmem:[%s5376_s7 + $0x140] ss:$8 sps:$4 sm:$0xff]  }
 0x1e8   : > { %1420 = vmatprep.subr.bf16.mxu0 %v3982_v28 }
 0x1eb   : > { %1421 = vmatpush2.bf16.msra.mxu0 %v3980_v29 }
 0x1ec   : > { %1422 = vmatprep.subr.bf16.mxu0 %v3985_v30 }
 0x1ef   : > { %1423 = vmatpush2.bf16.msra.mxu0 %v3983_v31 }
 0x1f0   : > { %1424 = vmatprep.subr.bf16.mxu0 %v3988_v32 }
 0x1f3   : > { %1425 = vmatpush2.bf16.msra.mxu0 %v3986_v33 }
 0x1f4   : > { %1426 = vmatprep.subr.bf16.mxu0 %v3991_v34 }
 0x1f7   : > { %1427 = vmatpush2.bf16.msra.mxu0 %v3989_v35 }
 0x1f8   : > { %1428 = vmatprep.subr.bf16.mxu0 %v3994_v36 }
 0x1fb   : > { %1429 = vmatpush2.bf16.msra.mxu0 %v3992_v38 }
 0x1fc   : > { %1430 = vmatprep.subr.bf16.mxu0 %v3997_v39 }
 0x1ff   : > { %1431 = vmatpush2.bf16.msra.mxu0 %v3995_v42 }
 0x200   : > { %2338 = vmatprep.subr.bf16.mxu0 %v4058_v19 }
 0x202   : > { %1433 = vmatmul.mubr.bf16.vlgmr.msra.gmra.mxu0 %v4489_v56  ;;  %v1184_v56 = vsel %vm1141_vm3, %v4481_v49, %v4634_v60  ;;  %v4027_v49 = vld [vmem:[%s5373_s4 + $0x2e4] ss:$8 sps:$4 sm:$0xff]  }
 0x203   : > { %1442 = vmatprep.mubr.bf16.mxu0 %v1193_v9  ;;  %1831 = vmatprep.subr.bf16.mxu1 %v4027_v49 }
 0x204   : > { %1832 = vmatpush2.bf16.msra.mxu1 %v4025_v1  ;;  %2339 = vmatpush1.bf16.msra.mxu0 %v4056_v18  ;;  %v4068_v18 = vld [vmem:[%s5376_s7 + $0x70] ss:$8 sps:$4 sm:$0xff]  }
 0x205   : > { %1833 = vmatprep.subr.bf16.mxu1 %v4030_v2  ;;  %2340 = vmatprep.subr.bf16.mxu0 %v4061_v20 }
 0x208   : > { %1834 = vmatpush2.bf16.msra.mxu1 %v4028_v3  ;;  %2341 = vmatpush1.bf16.msra.mxu0 %v4059_v22 }
 0x209   : > { %1835 = vmatprep.subr.bf16.mxu1 %v4034_v5  ;;  %2342 = vmatprep.subr.bf16.mxu0 %v4064_v24  ;;  %v1490_v24 = vld [vmem:[#allocation2 + $0x50] sm:$0x11] }
 0x20a   : > { %1443 = vmatmul.mubr.bf16.gmra.mxu0 %v1184_v56 }
 0x20c   : > { %1836 = vmatpush2.bf16.msra.mxu1 %v4032_v6  ;;  %2343 = vmatpush1.bf16.msra.mxu0 %v4062_v25 }
 0x20d   : > { %1837 = vmatprep.subr.bf16.mxu1 %v4038_v8  ;;  %2344 = vmatprep.subr.bf16.mxu0 %v4067_v26 }
 0x210   : > { %1838 = vmatpush2.bf16.msra.mxu1 %v4036_v10  ;;  %2345 = vmatpush1.bf16.msra.mxu0 %v4065_v27 }
 0x211   : > { %1839 = vmatprep.subr.bf16.mxu1 %v4045_v12 }
 0x214   : > { %1840 = vmatpush2.bf16.msra.mxu1 %v4043_v13 }
 0x215   : > { %1841 = vmatprep.subr.bf16.mxu1 %v4049_v14 }
 0x218   : > { %1842 = vmatpush2.bf16.msra.mxu1 %v4047_v15 }
 0x219   : > { %1843 = vmatprep.subr.bf16.mxu1 %v4053_v16 }
 0x21c   : > { %1844 = vmatpush2.bf16.msra.mxu1 %v4051_v17 }
 0x21d   : > { %2688 = vmatprep.subr.bf16.mxu1 %v4070_v23 }
 0x282   : > { %v3869_v28 = vpop.f32.mrf.mxu0 }
 0x283   : > { %v3808_v29 = vpack.c.bf16 %v3869_v28, %v3869_v28 }
 0x284   : > { %v721_v30 = vpop.f32.mrf.mxu0 }
 0x285   : > { %754 = vst [vmem:[#allocation2 + $0x40] sm:$0xf] %v3808_v29  ;;  %v3806_v31 = vpack.c.bf16 %v721_v30, %v721_v30 }
 0x286   : > { %v3870_v32 = vpop.f32.mrf.mxu0 }
 0x287   : > { %752 = vst [vmem:[#allocation2 + $0x30] sm:$0xf] %v3806_v31  ;;  %v3809_v33 = vpack.c.bf16 %v3870_v32, %v3870_v32 }
 0x288   : > { %v724_v34 = vpop.f32.mrf.mxu0 }
 0x289   : > { %755 = vst [vmem:[#allocation2 + $0x48] sm:$0xf] %v3809_v33  ;;  %v3807_v35 = vpack.c.bf16 %v724_v34, %v724_v34 }
 0x28b   : > { %753 = vst [vmem:[#allocation2 + $0x38] sm:$0xf] %v3807_v35 }
 0x28c   : > { %v773_v39 = vld [vmem:[#allocation2 + $0x40] sm:$0xff] }
 0x28e   : > { %v771_v36 = vld [vmem:[#allocation2 + $0x30] sm:$0xff] }
 0x28f   : > { %v4721_v37 = vcombine.high %v4225_v52, %v771_v36  ;;  %v4724_v38 = vcombine.low %v4225_v52, %v771_v36 }
 0x290   : > { %v4726_v40 = vld [vmem:[#allocation2 + $0x48] sm:$0xff] }
 0x291   : > { %1099 = vmatprep.mubr.bf16.mxu1 %v4721_v37  ;;  %v3483_v41 = vcombine.high %v773_v39, %v4726_v40  ;;  %v3482_v58 = vcombine.low %v773_v39, %v4726_v40  ;;  %v3441_v0 = vcombine.high %v4726_v40, %v4726_v40  ;;  %v3440_v14 = vcombine.low %v4726_v40, %v4726_v40 }
 0x292   : > { %1100 = vmatmul.mubr.bf16.gmra.mxu1 %v4724_v38  ;;  %v772_v42 = vld [vmem:[#allocation2 + $0x38] sm:$0xff]  ;;  %v1601_v16 = vshll.u32 %v4721_v37, 16  ;;  %v1593_v20 = vshll.u32 %v4724_v38, 16  ;;  %v1613_v25 = vshrl.u32 %v4721_v37, 16  ;;  %v3557_v28 = vcombine.high %v4726_v40, %v1490_v24 }
 0x293   : > { %v4731_v43 = vcombine.high %v772_v42, %v773_v39  ;;  %v3481_v45 = vcombine.high %v771_v36, %v772_v42  ;;  %v3480_v46 = vcombine.low %v771_v36, %v772_v42  ;;  %v1222_v48 = vshrl.u32 %v3483_v41, 16 }
 0x294   : > { %v1225_v50 = vshll.u32 %v3483_v41, 16  ;;  %v4735_v63 = vcombine.low %v772_v42, %v773_v39  ;;  %v1213_v2 = vshrl.u32 %v3482_v58, 16  ;;  %v1216_v3 = vshll.u32 %v3482_v58, 16  ;;  %v4080_v58 = vld [vmem:[%s5376_s7 + $0x50] ss:$8 sps:$4 sm:$0xff]  }
 0x295   : > { %1109 = vmatprep.mubr.bf16.mxu1 %v4731_v43  ;;  %v1204_v52 = vshrl.u32 %v3481_v45, 16  ;;  %v1207_v51 = vshll.u32 %v3481_v45, 16  ;;  %v1195_v53 = vshrl.u32 %v3480_v46, 16  ;;  %v1198_v9 = vshll.u32 %v3480_v46, 16 }
 0x296   : > { %v1224_v55 = vrot.slane %v1222_v48, 3  ;;  %v1227_v57 = vrot.slane %v1225_v50, 4  ;;  %v1215_v12 = vrot.slane %v1213_v2, 3  ;;  %v1218_v13 = vrot.slane %v1216_v3, 4  ;;  %v4094_v2 = vld [vmem:[%s5376_s7 + $0x34] ss:$8 sps:$4 sm:$0xff]  }
 0x297   : > { %v1206_v59 = vrot.slane %v1204_v52, 3  ;;  %v1209_v56 = vrot.slane %v1207_v51, 4  ;;  %v1197_v47 = vrot.slane %v1195_v53, 3  ;;  %v1200_v62 = vrot.slane %v1198_v9, 4  ;;  %v4071_v52 = vld [vmem:[%s5376_s7 + $0x130] ss:$8 sps:$4 sm:$0xff]  }
 0x298   : > { %v1228_v8 = vor.u32 %v1227_v57, %v1224_v55  ;;  %v1219_v15 = vor.u32 %v1218_v13, %v1215_v12  ;;  %v1603_v17 = vrot.slane %v1601_v16, 1  ;;  %v1595_v23 = vrot.slane %v1593_v20, 1  ;;  %v4073_v51 = vld [vmem:[%s5376_s7 + $0x134] ss:$8 sps:$4 sm:$0xff]   ;;  %v4074_v53 = vld [vmem:[%s5376_s7 + $0x60] ss:$8 sps:$4 sm:$0xff]  }
 0x299   : > { %v1210_v49 = vor.u32 %v1209_v56, %v1206_v59  ;;  %v1201_v1 = vor.u32 %v1200_v62, %v1197_v47  ;;  %v1609_v29 = vshll.u32 %v4735_v63, 16  ;;  %v1633_v31 = vshll.u32 %v3557_v28, 16  ;;  %v4076_v9 = vld [vmem:[%s5376_s7 + $0x64] ss:$8 sps:$4 sm:$0xff]   ;;  %2346 = vmatprep.subr.bf16.mxu0 %v4073_v51  ;;  %v4077_v55 = vld [vmem:[%s5376_s7 + $0x120] ss:$8 sps:$4 sm:$0xff]  }
 0x29a   : > { %1110 = vmatmul.mubr.bf16.gmra.mxu1 %v4735_v63  ;;  %v1615_v27 = vor.u32 %v1613_v25, %v1603_v17  ;;  %v1605_v32 = vshrl.u32 %v4724_v38, 16  ;;  %v1621_v41 = vshrl.u32 %v4735_v63, 16  ;;  %v1640_v46 = vshrl.u32 %v3557_v28, 16  ;;  %2347 = vmatpush1.bf16.msra.mxu0 %v4071_v52  ;;  %v4079_v57 = vld [vmem:[%s5376_s7 + $0x124] ss:$8 sps:$4 sm:$0xff]  }
 0x29b   : > { %1119 = vmatprep.mubr.bf16.mxu1 %v3441_v0  ;;  %v1211_v5 = vsel %vm1141_vm3, %v4622_v54, %v1210_v49  ;;  %v1202_v6 = vsel %vm1141_vm3, %v4634_v60, %v1201_v1  ;;  %v1229_v10 = vsel %vm1141_vm3, %v1210_v49, %v1228_v8  ;;  %v1220_v54 = vsel %vm1141_vm3, %v1201_v1, %v1219_v15  ;;  %v4082_v59 = vld [vmem:[%s5376_s7 + $0x54] ss:$8 sps:$4 sm:$0xff]   ;;  %v4083_v56 = vld [vmem:[%s5376_s7 + $0x110] ss:$8 sps:$4 sm:$0xff]   ;;  %v4086_v62 = vld [vmem:[%s5376_s7 + $0x40] ss:$8 sps:$4 sm:$0xff]  }
 0x29c   : > { %1452 = vmatprep.mubr.bf16.mxu0 %v1211_v5  ;;  %v1597_v60 = vshrl.u32 %v4454_v21, 16  ;;  %v1589_v21 = vshrl.u32 %v4474_v44, 16  ;;  %v1629_v44 = vshrl.u32 %v4731_v43, 16  ;;  %v1611_v33 = vrot.slane %v1609_v29, 1  ;;  %2348 = vmatprep.subr.bf16.mxu0 %v4079_v57  ;;  %v4085_v47 = vld [vmem:[%s5376_s7 + $0x114] ss:$8 sps:$4 sm:$0xff]  }
 0x29d   : > { %1453 = vmatmul.mubr.bf16.gmra.mxu0 %v1202_v6  ;;  %v1607_v35 = vor.u32 %v1605_v32, %v1595_v23  ;;  %v1635_v36 = vrot.slane %v1633_v31, 1  ;;  %v4088_v63 = vld [vmem:[%s5376_s7 + $0x44] ss:$8 sps:$4 sm:$0xff]   ;;  %v4089_v0 = vld [vmem:[%s5376_s7 + $0x100] ss:$8 sps:$4 sm:$0xff]  }
 0x29e   : > { %1462 = vmatprep.mubr.bf16.mxu0 %v1229_v10  ;;  %v1599_v19 = vor.u32 %v1597_v60, %v4499_v61  ;;  %v1591_v61 = vor.u32 %v1589_v21, %v4519_v7  ;;  %v3556_v7 = vcombine.low %v4726_v40, %v1490_v24  ;;  %v1623_v45 = vor.u32 %v1621_v41, %v1611_v33  ;;  %v4091_v49 = vld [vmem:[%s5376_s7 + $0x104] ss:$8 sps:$4 sm:$0xff]   ;;  %v4092_v1 = vld [vmem:[%s5376_s7 + $0x30] ss:$8 sps:$4 sm:$0xff]   ;;  %v4097_v5 = vld [vmem:[%s5376_s7 + $0x1f4] ss:$8 sps:$4 sm:$0xff]   ;;  %v1081_v41 = vpop.f32.mrf.mxu1 }
 0x29f   : > { %v1612_v37 = vsel %vm1564_vm4, %v1607_v35, %v1611_v33  ;;  %v1642_v48 = vor.u32 %v1640_v46, %v1635_v36  ;;  %2349 = vmatpush1.bf16.msra.mxu0 %v4077_v55  ;;  %v4095_v3 = vld [vmem:[%s5376_s7 + $0x1f0] ss:$8 sps:$4 sm:$0xff]   ;;  %v4098_v6 = vld [vmem:[%s5376_s7 + $0x20] ss:$8 sps:$4 sm:$0xff]   ;;  %v4103_v12 = vld [vmem:[%s5376_s7 + $0x1e4] ss:$8 sps:$4 sm:$0xff]  }
 0x2a0   : > { %v1604_v22 = vsel %vm1564_vm4, %v1599_v19, %v1603_v17  ;;  %v1625_v42 = vshll.u32 %v3556_v7, 16  ;;  %v1637_v50 = vshrl.u32 %v3556_v7, 16  ;;  %2350 = vmatprep.subr.bf16.mxu0 %v4085_v47  ;;  %v4101_v10 = vld [vmem:[%s5376_s7 + $0x1e0] ss:$8 sps:$4 sm:$0xff]   ;;  %v4104_v13 = vld [vmem:[%s5376_s7 + $0x10] ss:$8 sps:$4 sm:$0xff]  }
 0x2a1   : > { %v4112_v16 = vld [vmem:[%s5376_s7 + $0x4] ss:$8 sps:$4 sm:$0xff]   ;;  %v4110_v60 = vld [vmem:[%s5376_s7] ss:$8 sps:$4 sm:$0xff]   ;;  %v4116_v20 = vld [vmem:[%s5376_s7 + $0xf0] ss:$8 sps:$4 sm:$0xff]  }
 0x2a2   : > { %1120 = vmatmul.mubr.bf16.gmra.mxu1 %v3440_v14  ;;  %v4106_v14 = vld [vmem:[%s5376_s7 + $0x14] ss:$8 sps:$4 sm:$0xff]   ;;  %v4115_v17 = vld [vmem:[%s5376_s7 + $0x1c4] ss:$8 sps:$4 sm:$0xff]   ;;  %v4113_v19 = vld [vmem:[%s5376_s7 + $0x1c0] ss:$8 sps:$4 sm:$0xff]  }
 0x2a3   : > { %1845 = vmatprep.mubr.bf16.mxu1 %v4514_v4  ;;  %v1617_v4 = vshll.u32 %v4731_v43, 16  ;;  %v1627_v43 = vrot.slane %v1625_v42, 1  ;;  %2351 = vmatpush1.bf16.msra.mxu0 %v4083_v56  ;;  %v4119_v21 = vld [vmem:[%s5376_s7 + $0x1b0] ss:$8 sps:$4 sm:$0xff]   ;;  %v4127_v24 = vld [vmem:[%s5376_s7 + $0x1a4] ss:$8 sps:$4 sm:$0xff]   ;;  %v1083_v42 = vpop.f32.mrf.mxu1 }
 0x2a4   : > { %2352 = vmatprep.subr.bf16.mxu0 %v4091_v49  ;;  %v4130_v25 = vld [vmem:[%s5376_s7 + $0xd4] ss:$8 sps:$4 sm:$0xff]   ;;  %v4136_v28 = vld [vmem:[%s5376_s7 + $0xc4] ss:$8 sps:$4 sm:$0xff]   ;;  %v4134_v29 = vld [vmem:[%s5376_s7 + $0xc0] ss:$8 sps:$4 sm:$0xff]  }
 0x2a5   : > { %1463 = vmatmul.mubr.bf16.gmra.mxu0 %v1220_v54  ;;  %v1619_v26 = vrot.slane %v1617_v4, 1  ;;  %v1628_v38 = vsel %vm1564_vm4, %v1623_v45, %v1627_v43  ;;  %v1639_v40 = vor.u32 %v1637_v50, %v1627_v43  ;;  %v4107_v54 = vld [vmem:[%s5376_s7 + $0x1d0] ss:$8 sps:$4 sm:$0xff]   ;;  %v4124_v4 = vld [vmem:[%s5376_s7 + $0xe4] ss:$8 sps:$4 sm:$0xff]   ;;  %v1085_v45 = vpop.f32.mrf.mxu1 }
 0x2a6   : > { %1472 = vmatprep.mubr.bf16.mxu0 %v1228_v8  ;;  %v4100_v8 = vld [vmem:[%s5376_s7 + $0x24] ss:$8 sps:$4 sm:$0xff]   ;;  %v4137_v31 = vld [vmem:[%s5376_s7 + $0x180] ss:$8 sps:$4 sm:$0xff]   ;;  %v4140_v32 = vld [vmem:[%s5376_s7 + $0xb0] ss:$8 sps:$4 sm:$0xff]  }
 0x2a7   : > { %v1620_v30 = vsel %vm1564_vm4, %v1615_v27, %v1619_v26  ;;  %v1631_v34 = vor.u32 %v1629_v44, %v1619_v26  ;;  %2353 = vmatpush1.bf16.msra.mxu0 %v4089_v0  ;;  %v4125_v26 = vld [vmem:[%s5376_s7 + $0x1a0] ss:$8 sps:$4 sm:$0xff]   ;;  %v4133_v27 = vld [vmem:[%s5376_s7 + $0x194] ss:$8 sps:$4 sm:$0xff]   ;;  %v4145_v33 = vld [vmem:[%s5376_s7 + $0xa4] ss:$8 sps:$4 sm:$0xff]   ;;  %v1087_v46 = vpop.f32.mrf.mxu1 }
 0x2a8   : > { %2354 = vmatprep.subr.bf16.mxu0 %v4097_v5  ;;  %v4142_v44 = vld [vmem:[%s5376_s7 + $0xb4] ss:$8 sps:$4 sm:$0xff]   ;;  %v4143_v35 = vld [vmem:[%s5376_s7 + $0xa0] ss:$8 sps:$4 sm:$0xff]  }
 0x2a9   : > { %v1636_v39 = vsel %vm1564_vm4, %v1631_v34, %v1635_v36  ;;  %v4148_v34 = vld [vmem:[%s5376_s7 + $0x274] ss:$8 sps:$4 sm:$0xff]   ;;  %v4149_v36 = vld [vmem:[%s5376_s7 + $0x90] ss:$8 sps:$4 sm:$0xff]  }
 0x2aa   : > { %1846 = vmatmul.mubr.bf16.vlgmr.msra.gmra.mxu1 %v4529_v11  ;;  %v1596_v11 = vsel %vm1564_vm4, %v1591_v61, %v1595_v23  ;;  %v4122_v23 = vld [vmem:[%s5376_s7 + $0xe0] ss:$8 sps:$4 sm:$0xff]   ;;  %v4128_v61 = vld [vmem:[%s5376_s7 + $0xd0] ss:$8 sps:$4 sm:$0xff]   ;;  %v4151_v7 = vld [vmem:[%s5376_s7 + $0x94] ss:$8 sps:$4 sm:$0xff]  }
 0x2ab   : > { %1855 = vmatprep.mubr.bf16.mxu1 %v1604_v22  ;;  %2689 = vmatpush1.bf16.msra.mxu1 %v4068_v18  ;;  %v4118_v18 = vld [vmem:[%s5376_s7 + $0xf4] ss:$8 sps:$4 sm:$0xff]  }
 0x2ac   : > { %2690 = vmatprep.subr.bf16.mxu1 %v4076_v9  ;;  %2355 = vmatpush2.bf16.msra.mxu0 %v4095_v3  ;;  %v4121_v22 = vld [vmem:[%s5376_s7 + $0x1b4] ss:$8 sps:$4 sm:$0xff]  }
 0x2ad   : > { %1473 = vmatmul.mubr.bf16.gmra.mxu0 %v1219_v15  ;;  %2356 = vmatprep.subr.bf16.mxu0 %v4103_v12  ;;  %v4109_v15 = vld [vmem:[%s5376_s7 + $0x1d4] ss:$8 sps:$4 sm:$0xff]  }
 0x2af   : > { %2691 = vmatpush1.bf16.msra.mxu1 %v4074_v53 }
 0x2b0   : > { %2692 = vmatprep.subr.bf16.mxu1 %v4082_v59  ;;  %2357 = vmatpush2.bf16.msra.mxu0 %v4101_v10 }
 0x2b1   : > { %2358 = vmatprep.subr.bf16.mxu0 %v4109_v15 }
 0x2b2   : > { %1856 = vmatmul.mubr.bf16.gmra.mxu1 %v1596_v11  ;;  %v4131_v11 = vld [vmem:[%s5376_s7 + $0x190] ss:$8 sps:$4 sm:$0xff]  }
 0x2b3   : > { %1865 = vmatprep.mubr.bf16.mxu1 %v1620_v30  ;;  %2693 = vmatpush1.bf16.msra.mxu1 %v4080_v58  ;;  %v4139_v30 = vld [vmem:[%s5376_s7 + $0x184] ss:$8 sps:$4 sm:$0xff]  }
 0x2b4   : > { %2694 = vmatprep.subr.bf16.mxu1 %v4088_v63  ;;  %2359 = vmatpush2.bf16.msra.mxu0 %v4107_v54  ;;  %v1912_v54 = vld [vmem:[%s5374_s5] sm:$0x3] }
 0x2b5   : > { %2360 = vmatprep.subr.bf16.mxu0 %v4115_v17 }
 0x2b7   : > { %2695 = vmatpush1.bf16.msra.mxu1 %v4086_v62 }
 0x2b8   : > { %2696 = vmatprep.subr.bf16.mxu1 %v4094_v2  ;;  %2361 = vmatpush2.bf16.msra.mxu0 %v4113_v19  ;;  %v1942_v19 = vld [vmem:[%s5375_s6] sm:$0x3] }
 0x2b9   : > { %2362 = vmatprep.subr.bf16.mxu0 %v4121_v22 }
 0x2ba   : > { %1866 = vmatmul.mubr.bf16.gmra.mxu1 %v1612_v37  ;;  %v4157_v37 = vld [vmem:[%s5376_s7 + $0x84] ss:$8 sps:$4 sm:$0xff]  }
 0x2bb   : > { %1875 = vmatprep.mubr.bf16.mxu1 %v1636_v39  ;;  %2697 = vmatpush1.bf16.msra.mxu1 %v4092_v1  ;;  %v4155_v39 = vld [vmem:[%s5376_s7 + $0x80] ss:$8 sps:$4 sm:$0xff]   ;;  %v1914_v1 = vlaneseq }
 0x2bc   : > { %2698 = vmatprep.subr.bf16.mxu1 %v4100_v8  ;;  %2363 = vmatpush2.bf16.msra.mxu0 %v4119_v21 }
 0x2bd   : > { %2364 = vmatprep.subr.bf16.mxu0 %v4127_v24  ;;  %v1915_v8 = vshrl.u32 %v1914_v1, 7 }
 0x2bf   : > { %2699 = vmatpush1.bf16.msra.mxu1 %v4098_v6  ;;  %v4960_v15 = vsub.s32 0, %v1915_v8  ;;  %v4967_v17 = vsub.s32 1, %v1915_v8 }
 0x2c0   : > { %2700 = vmatprep.subr.bf16.mxu1 %v4106_v14  ;;  %2365 = vmatpush2.bf16.msra.mxu0 %v4125_v26 }
 0x2c1   : > { %2366 = vmatprep.subr.bf16.mxu0 %v4133_v27 }
 0x2c2   : > { %1876 = vmatmul.mubr.bf16.gmra.mxu1 %v1628_v38  ;;  %v1434_v43 = vpop.f32.mrf.mxu0 }
 0x2c3   : > { %1885 = vmatprep.mubr.bf16.mxu1 %v1642_v48  ;;  %2701 = vmatpush1.bf16.msra.mxu1 %v4104_v13  ;;  %v1091_v48 = vpop.f32.mrf.mxu1 }
 0x2c4   : > { %2702 = vmatprep.subr.bf16.mxu1 %v4112_v16  ;;  %2367 = vmatpush2.bf16.msra.mxu0 %v4131_v11  ;;  %v1436_v38 = vpop.f32.mrf.mxu0 }
 0x2c5   : > { %2368 = vmatprep.subr.bf16.mxu0 %v4139_v30  ;;  %v4987_v30 = vrot.slane %v1942_v19, %v4967_v17 }
 0x2c6   : > { %v1438_v50 = vpop.f32.mrf.mxu0 }
 0x2c7   : > { %2703 = vmatpush1.bf16.msra.mxu1 %v4110_v60 }
 0x2c8   : > { %2704 = vmatprep.subr.bf16.mxu1 %v4118_v18  ;;  %2369 = vmatpush2.bf16.msra.mxu0 %v4137_v31  ;;  %v1440_v52 = vpop.f32.mrf.mxu0 }
 0x2c9   : > { %3098 = vmatprep.subr.bf16.mxu0 %v4148_v34 }
 0x2ca   : > { %1886 = vmatmul.mubr.bf16.gmra.mxu1 %v1639_v40  ;;  %v4938_v40 = vpop.f32.mrf.mxu1  ;;  %v1444_v53 = vpop.f32.mrf.mxu0 }
 0x2cb   : > { %2705 = vmatpush2.bf16.msra.mxu1 %v4116_v20  ;;  %v1435_v20 = vadd.f32 %v1434_v43, %v1081_v41 }
 0x2cc   : > { %2706 = vmatprep.subr.bf16.mxu1 %v4124_v4  ;;  %v4940_v51 = vpop.f32.mrf.mxu1  ;;  %v1446_v57 = vpop.f32.mrf.mxu0  ;;  %v4975_v4 = vrot.slane %v1912_v54, %v4960_v15 }
 0x2ce   : > { %v4942_v9 = vpop.f32.mrf.mxu1  ;;  %v1448_v56 = vpop.f32.mrf.mxu0 }
 0x2cf   : > { %2707 = vmatpush2.bf16.msra.mxu1 %v4122_v23  ;;  %v1437_v23 = vadd.f32 %v1436_v38, %v1083_v42 }
 0x2d0   : > { %2708 = vmatprep.subr.bf16.mxu1 %v4130_v25  ;;  %v1450_v63 = vpop.f32.mrf.mxu0  ;;  %v4978_v25 = vrot.slane %v1942_v19, %v4960_v15 }
 0x2d3   : > { %2709 = vmatpush2.bf16.msra.mxu1 %v4128_v61  ;;  %v4983_v61 = vrot.slane %v1912_v54, %v4967_v17  ;;  %v1451_v54 = vadd.f32 %v1450_v63, %v4942_v9 }
 0x2d4   : > { %2710 = vmatprep.subr.bf16.mxu1 %v4136_v28  ;;  %v1439_v28 = vadd.f32 %v1438_v50, %v1085_v45 }
 0x2d7   : > { %2711 = vmatpush2.bf16.msra.mxu1 %v4134_v29 }
 0x2d8   : > { %2712 = vmatprep.subr.bf16.mxu1 %v4142_v44 }
 0x2db   : > { %2713 = vmatpush2.bf16.msra.mxu1 %v4140_v32  ;;  %v1441_v32 = vadd.f32 %v1440_v52, %v1087_v46 }
 0x2dc   : > { %2714 = vmatprep.subr.bf16.mxu1 %v4145_v33 }
 0x2df   : > { %2715 = vmatpush2.bf16.msra.mxu1 %v4143_v35 }
 0x2e0   : > { %2716 = vmatprep.subr.bf16.mxu1 %v4151_v7 }
 0x2e3   : > { %2717 = vmatpush2.bf16.msra.mxu1 %v4149_v36 }
 0x2e4   : > { %2718 = vmatprep.subr.bf16.mxu1 %v4157_v37  ;;  %v1445_v37 = vadd.f32 %v1444_v53, %v1091_v48  ;;  %v2056_v48 = vld [vmem:[#allocation3 + $0x28] sm:$0x88]  ;;  %v1449_v53 = vadd.f32 %v1448_v56, %v4940_v51 }
 0x2e7   : > { %2719 = vmatpush2.bf16.msra.mxu1 %v4155_v39 }
 0x352   : > { %v1101_v55 = vpop.f32.mrf.mxu1 }
 0x354   : > { %v1103_v58 = vpop.f32.mrf.mxu1 }
 0x356   : > { %v4944_v59 = vpop.f32.mrf.mxu1 }
 0x358   : > { %v4946_v47 = vpop.f32.mrf.mxu1 }
 0x35a   : > { %v4948_v62 = vpop.f32.mrf.mxu1 }
 0x35c   : > { %v4950_v0 = vpop.f32.mrf.mxu1 }
 0x35d   : > { %v1454_v49 = vpop.f32.mrf.mxu0 }
 0x35e   : > { %v4952_v2 = vpop.f32.mrf.mxu1  ;;  %v1447_v49 = vadd.f32 %v1446_v57, %v4938_v40 }
 0x35f   : > { %v1456_v3 = vpop.f32.mrf.mxu0 }
 0x360   : > { %v4954_v5 = vpop.f32.mrf.mxu1 }
 0x361   : > { %v1458_v6 = vpop.f32.mrf.mxu0 }
 0x362   : > { %v4956_v10 = vpop.f32.mrf.mxu1 }
 0x363   : > { %v1460_v12 = vpop.f32.mrf.mxu0 }
 0x364   : > { %v4958_v13 = vpop.f32.mrf.mxu1  ;;  %v1461_v57 = vadd.f32 %v1460_v12, %v4946_v47 }
 0x365   : > { %v1464_v14 = vpop.f32.mrf.mxu0 }
 0x366   : > { %v1125_v16 = vpop.f32.mrf.mxu1  ;;  %v1465_v9 = vadd.f32 %v1464_v14, %v4948_v62 }
 0x367   : > { %v4965_v60 = vpop.f32.mrf.mxu0 }
 0x368   : > { %v1126_v18 = vpop.f32.mrf.mxu1 }
 0x369   : > { %v4972_v22 = vpop.f32.mrf.mxu0  ;;  %v1459_v18 = vadd.f32 %v1458_v6, %v4944_v59 }
 0x36a   : > { %v1847_v21 = vpop.f32.mrf.mxu1 }
 0x36b   : > { %v1894_v24 = vadd.f32 %v1847_v21, %v1435_v20  ;;  %v4980_v26 = vpop.f32.mrf.mxu0 }
 0x36c   : > { %v1849_v27 = vpop.f32.mrf.mxu1 }
 0x36d   : > { %v1924_v11 = vmul.f32 %v4975_v4, %v1894_v24  ;;  %v1895_v29 = vadd.f32 %v1849_v27, %v1437_v23  ;;  %v4989_v44 = vpop.f32.mrf.mxu0 }
 0x36e   : > { %v1851_v31 = vpop.f32.mrf.mxu1 }
 0x36f   : > { %v1954_v33 = vadd.f32 %v4978_v25, %v1924_v11  ;;  %v1925_v34 = vmul.f32 %v4983_v61, %v1895_v29  ;;  %v1896_v35 = vadd.f32 %v1851_v31, %v1439_v28  ;;  %v4993_v7 = vpop.f32.mrf.mxu0 }
 0x370   : > { %v1853_v36 = vpop.f32.mrf.mxu1 }
 0x371   : > { %v1955_v39 = vadd.f32 %v4987_v30, %v1925_v34  ;;  %v1926_v41 = vmul.f32 %v4975_v4, %v1896_v35  ;;  %v1897_v42 = vadd.f32 %v1853_v36, %v1441_v32  ;;  %v1478_v45 = vpop.f32.mrf.mxu0  ;;  %v1972_v43 = vmax.f32 %v1954_v33, 0.0  ;;  %v4146_v34 = vld [vmem:[%s5376_s7 + $0x270] ss:$8 sps:$4 sm:$0xff]  }
 0x372   : > { %v1857_v38 = vpop.f32.mrf.mxu1 }
 0x373   : > { %v1973_v50 = vmax.f32 %v1955_v39, 0.0  ;;  %v4998_v46 = vadd.f32 %v4978_v25, %v1926_v41  ;;  %v1927_v52 = vmul.f32 %v4983_v61, %v1897_v42  ;;  %v1898_v55 = vadd.f32 %v1857_v38, %v1445_v37  ;;  %v1479_v58 = vpop.f32.mrf.mxu0  ;;  %v4154_v37 = vld [vmem:[%s5376_s7 + $0x264] ss:$8 sps:$4 sm:$0xff]  }
 0x374   : > { %v1859_v1 = vpop.f32.mrf.mxu1  ;;  %v1467_v42 = vadd.f32 %v4965_v60, %v4950_v0 }
 0x375   : > { %v3810_v3 = vpack.c.bf16 %v1973_v50, %v1972_v43  ;;  %v1957_v8 = vadd.f32 %v4987_v30, %v1927_v52  ;;  %v1928_v16 = vmul.f32 %v4975_v4, %v1898_v55  ;;  %v1899_v19 = vadd.f32 %v1859_v1, %v1447_v49  ;;  %v4152_v49 = vld [vmem:[%s5376_s7 + $0x260] ss:$8 sps:$4 sm:$0xff]  }
 0x376   : > { %v1861_v20 = vpop.f32.mrf.mxu1  ;;  %v1974_v21 = vmax.f32 %v4998_v46, 0.0  ;;  %v5043_v46 = vadd.f32 %v4980_v26, %v4954_v5  ;;  %v5047_v52 = vadd.f32 %v4989_v44, %v4956_v10  ;;  %v5057_v5 = vadd.f32 %v4993_v7, %v4958_v13  ;;  %v4160_v26 = vld [vmem:[%s5376_s7 + $0x254] ss:$8 sps:$4 sm:$0xff]  }
 0x377   : > { %v1975_v23 = vmax.f32 %v1957_v8, 0.0  ;;  %v1900_v24 = vadd.f32 %v1861_v20, %v1449_v53  ;;  %v3673_v40 = vcombine.low %v2056_v48, %v3810_v3  ;;  %v5010_v51 = vadd.f32 %v4978_v25, %v1928_v16 }
 0x378   : > { %v1929_v56 = vmul.f32 %v4983_v61, %v1899_v19  ;;  %v1863_v27 = vpop.f32.mrf.mxu1  ;;  %v3674_v28 = vcombine.high %v2056_v48, %v3810_v3  ;;  %v5023_v62 = vpack.c.bf16 %v1974_v21, %v1972_v43 }
 0x379   : > { %v1930_v59 = vmul.f32 %v4975_v4, %v1900_v24  ;;  %v1901_v63 = vadd.f32 %v1863_v27, %v1451_v54  ;;  %v2431_v32 = vshrl.u32 %v3673_v40, 16  ;;  %v5018_v33 = vpack.c.bf16 %v1975_v23, %v1973_v50  ;;  %v4158_v24 = vld [vmem:[%s5376_s7 + $0x250] ss:$8 sps:$4 sm:$0xff]  }
 0x37a   : > { %v1959_v6 = vadd.f32 %v4987_v30, %v1929_v56  ;;  %v1867_v11 = vpop.f32.mrf.mxu1  ;;  %v2448_v29 = vshrl.u32 %v3674_v28, 16  ;;  %v2451_v31 = vshll.u32 %v3674_v28, 16  ;;  %v1976_v14 = vmax.f32 %v5010_v51, 0.0  ;;  %v4163_v28 = vld [vmem:[%s5376_s7 + $0x244] ss:$8 sps:$4 sm:$0xff]  }
 0x37b   : > { %v1960_v47 = vadd.f32 %v4978_v25, %v1930_v59  ;;  %v1931_v12 = vmul.f32 %v4983_v61, %v1901_v63  ;;  %2370 = vmatprep.mubr.bf16.mxu0 %v5018_v33  ;;  %v5037_v43 = vrot.slane %v2431_v32, 3  ;;  %v2434_v38 = vshll.u32 %v3673_v40, 16  ;;  %v4200_v32 = vld [vmem:[#allocation2] sm:$0xff] }
 0x37c   : > { %v1977_v35 = vmax.f32 %v1959_v6, 0.0  ;;  %v1869_v36 = vpop.f32.mrf.mxu1  ;;  %v5029_v39 = vrot.slane %v2448_v29, 3  ;;  %v5031_v41 = vrot.slane %v2451_v31, 4  ;;  %v1469_v50 = vadd.f32 %v4972_v22, %v4952_v2  ;;  %2371 = vmatmul.mubr.bf16.vlgmr.msra.gmra.mxu0 %v5023_v62 }
 0x37d   : > { %v1961_v45 = vadd.f32 %v4987_v30, %v1931_v12  ;;  %v1978_v0 = vmax.f32 %v1960_v47, 0.0  ;;  %3099 = vmatpush1.bf16.msra.mxu0 %v4146_v34  ;;  %v5053_v2 = vrot.slane %v2434_v38, 4  ;;  %v4203_v10 = vpack.c.bf16 %v1976_v14, %v1974_v21 }
 0x37e   : > { %v1871_v55 = vpop.f32.mrf.mxu1  ;;  %3100 = vmatprep.subr.bf16.mxu0 %v4154_v37  ;;  %v4204_v44 = vpack.c.bf16 %v1977_v35, %v1975_v23  ;;  %v2454_v1 = vor.u32 %v5031_v41, %v5029_v39  ;;  %v4161_v37 = vld [vmem:[%s5376_s7 + $0x240] ss:$8 sps:$4 sm:$0xff]  }
 0x37f   : > { %v1979_v60 = vmax.f32 %v1961_v45, 0.0  ;;  %v1904_v58 = vadd.f32 %v1871_v55, %v1459_v18  ;;  %v2437_v8 = vor.u32 %v5053_v2, %v5037_v43  ;;  %v2439_v54 = vshrl.u32 %v4203_v10, 16  ;;  %v4166_v45 = vld [vmem:[%s5376_s7 + $0x234] ss:$8 sps:$4 sm:$0xff]  }
 0x380   : > { %v1873_v22 = vpop.f32.mrf.mxu1  ;;  %v2456_v7 = vshrl.u32 %v4204_v44, 16  ;;  %v2459_v16 = vshll.u32 %v4204_v44, 16  ;;  %v2442_v18 = vshll.u32 %v4203_v10, 16 }
 0x381   : > { %v3813_v48 = vpack.c.bf16 %v1979_v60, %v1978_v0  ;;  %v1934_v53 = vmul.f32 %v4975_v4, %v1904_v58  ;;  %v1905_v3 = vadd.f32 %v1873_v22, %v1461_v57  ;;  %3101 = vmatpush1.bf16.msra.mxu0 %v4152_v49  ;;  %v5071_v23 = vpack.c.bf16 %v1979_v60, %v1977_v35 }
 0x382   : > { %v1877_v13 = vpop.f32.mrf.mxu1  ;;  %3102 = vmatprep.subr.bf16.mxu0 %v4160_v26  ;;  %v5076_v57 = vpack.c.bf16 %v1978_v0, %v1976_v14  ;;  %v2458_v51 = vrot.slane %v2456_v7, 3  ;;  %v2461_v56 = vrot.slane %v2459_v16, 4  ;;  %v2441_v27 = vrot.slane %v2439_v54, 3  ;;  %v4169_v7 = vld [vmem:[%s5376_s7 + $0x224] ss:$8 sps:$4 sm:$0xff]  }
 0x383   : > { %v5068_v19 = vadd.f32 %v4978_v25, %v1934_v53  ;;  %v1935_v20 = vmul.f32 %v4983_v61, %v1905_v3  ;;  %v1906_v21 = vadd.f32 %v1877_v13, %v1465_v9  ;;  %2380 = vmatprep.mubr.bf16.mxu0 %v5071_v23  ;;  %v2444_v31 = vrot.slane %v2442_v18, 4 }
 0x384   : > { %v1879_v40 = vpop.f32.mrf.mxu1  ;;  %2381 = vmatmul.mubr.bf16.gmra.mxu0 %v5076_v57  ;;  %v2462_v29 = vor.u32 %v2461_v56, %v2458_v51  ;;  %v3678_v47 = vcombine.high %v3813_v48, %v4200_v32  ;;  %v3677_v12 = vcombine.low %v3813_v48, %v4200_v32 }
 0x385   : > { %v1982_v9 = vmax.f32 %v5068_v19, 0.0  ;;  %v5083_v59 = vadd.f32 %v4987_v30, %v1935_v20  ;;  %v1936_v63 = vmul.f32 %v4975_v4, %v1906_v21  ;;  %v1907_v6 = vadd.f32 %v1879_v40, %v1467_v42  ;;  %3103 = vmatpush1.bf16.msra.mxu0 %v4158_v24  ;;  %v4170_v19 = vld [vmem:[%s5376_s7 + $0x210] ss:$8 sps:$4 sm:$0xff]  }
 0x386   : > { %v1881_v11 = vpop.f32.mrf.mxu1  ;;  %v2463_v41 = vsel %vm1141_vm3, %v2454_v1, %v2462_v29  ;;  %v5097_v42 = vor.u32 %v2444_v31, %v2441_v27  ;;  %3104 = vmatprep.subr.bf16.mxu0 %v4163_v28  ;;  %v2474_v43 = vshrl.u32 %v3678_v47, 16  ;;  %v2477_v38 = vshll.u32 %v3678_v47, 16 }
 0x387   : > { %v1983_v34 = vmax.f32 %v5083_v59, 0.0  ;;  %v5090_v14 = vadd.f32 %v4978_v25, %v1936_v63  ;;  %v1937_v35 = vmul.f32 %v4983_v61, %v1907_v6  ;;  %v1908_v36 = vadd.f32 %v1881_v11, %v1469_v50  ;;  %2720 = vmatprep.mubr.bf16.mxu1 %v2463_v41  ;;  %v4172_v6 = vld [vmem:[%s5376_s7 + $0x214] ss:$8 sps:$4 sm:$0xff]  }
 0x388   : > { %v1883_v39 = vpop.f32.mrf.mxu1  ;;  %v2446_v2 = vsel %vm1141_vm3, %v2437_v8, %v5097_v42  ;;  %v2476_v22 = vrot.slane %v2474_v43, 3  ;;  %v2479_v10 = vrot.slane %v2477_v38, 4  ;;  %v2468_v40 = vshll.u32 %v3677_v12, 16 }
 0x389   : > { %v3815_v50 = vpack.c.bf16 %v1983_v34, %v1982_v9  ;;  %v1984_v55 = vmax.f32 %v5090_v14, 0.0  ;;  %v1967_v0 = vadd.f32 %v4987_v30, %v1937_v35  ;;  %v1938_v60 = vmul.f32 %v4975_v4, %v1908_v36  ;;  %2721 = vmatmul.mubr.bf16.vlgmr.msra.gmra.mxu1 %v2446_v2  ;;  %3105 = vmatpush1.bf16.msra.mxu0 %v4161_v37 }
 0x38a   : > { %v1909_v58 = vadd.f32 %v1883_v39, %v5043_v46  ;;  %v1887_v49 = vpop.f32.mrf.mxu1  ;;  %v4164_v46 = vld [vmem:[%s5376_s7 + $0x230] ss:$8 sps:$4 sm:$0xff]   ;;  %3106 = vmatprep.subr.bf16.mxu0 %v4166_v45  ;;  %v2480_v13 = vor.u32 %v2479_v10, %v2476_v22  ;;  %v2470_v63 = vrot.slane %v2468_v40, 4  ;;  %v4175_v45 = vld [vmem:[%s5376_s7 + $0x204] ss:$8 sps:$4 sm:$0xff]  }
 0x38b   : > { %v1985_v26 = vmax.f32 %v1967_v0, 0.0  ;;  %v5111_v44 = vadd.f32 %v4978_v25, %v1938_v60  ;;  %v1910_v1 = vadd.f32 %v1887_v49, %v5047_v52  ;;  %v5114_v48 = vcombine.high %v4200_v32, %v3815_v50  ;;  %v4173_v60 = vld [vmem:[%s5376_s7 + $0x200] ss:$8 sps:$4 sm:$0xff]   ;;  %v4178_v22 = vld [vmem:[%s5376_s7 + $0x2f4] ss:$8 sps:$4 sm:$0xff]  }
 0x38c   : > { %v1939_v53 = vmul.f32 %v4983_v61, %v1909_v58  ;;  %v1889_v3 = vpop.f32.mrf.mxu1  ;;  %v5120_v8 = vcombine.low %v4200_v32, %v3815_v50  ;;  %v2465_v52 = vshrl.u32 %v3677_v12, 16  ;;  %v2481_v21 = vsel %vm1141_vm3, %v2462_v29, %v2480_v13 }
 0x38d   : > { %v1940_v16 = vmul.f32 %v4975_v4, %v1910_v1  ;;  %v1911_v54 = vadd.f32 %v1889_v3, %v5057_v5  ;;  %2390 = vmatprep.mubr.bf16.mxu0 %v5114_v48  ;;  %3107 = vmatpush1.bf16.msra.mxu0 %v4164_v46  ;;  %v4167_v4 = vld [vmem:[%s5376_s7 + $0x220] ss:$8 sps:$4 sm:$0xff]   ;;  %v4207_v5 = vpack.c.bf16 %v1985_v26, %v1983_v34  ;;  %v1986_v27 = vmax.f32 %v5111_v44, 0.0 }
 0x38e   : > { %v1969_v18 = vadd.f32 %v4987_v30, %v1939_v53  ;;  %v1891_v20 = vpop.f32.mrf.mxu1  ;;  %2391 = vmatmul.mubr.bf16.gmra.mxu0 %v5120_v8  ;;  %v2467_v24 = vrot.slane %v2465_v52, 3  ;;  %2730 = vmatprep.mubr.bf16.mxu1 %v2481_v21  ;;  %v2870_v0 = vshll.u32 %v5071_v23, 16  ;;  %v2863_v53 = vshrl.u32 %v5018_v33, 16  ;;  %v4181_v21 = vld [vmem:[%s5376_s7 + $0x2e4] ss:$8 sps:$4 sm:$0xff]  }
 0x38f   : > { %v1970_v51 = vadd.f32 %v4978_v25, %v1940_v16  ;;  %v1941_v56 = vmul.f32 %v4983_v61, %v1911_v54  ;;  %3108 = vmatprep.subr.bf16.mxu0 %v4169_v7  ;;  %v4208_v25 = vpack.c.bf16 %v1984_v55, %v1982_v9  ;;  %v2492_v11 = vshrl.u32 %v4207_v5, 16 }
 0x390   : > { %v1987_v28 = vmax.f32 %v1969_v18, 0.0  ;;  %v1892_v59 = vpop.f32.mrf.mxu1  ;;  %v2495_v29 = vshll.u32 %v4207_v5, 16  ;;  %v2471_v31 = vor.u32 %v2470_v63, %v2467_v24  ;;  %v2872_v3 = vrot.slane %v2870_v0, 1  ;;  %v4190_v63 = vld [vmem:[%s5376_s7 + $0x2b4] ss:$8 sps:$4 sm:$0xff]  }
 0x391   : > { %v1971_v61 = vadd.f32 %v4987_v30, %v1941_v56  ;;  %v2483_v32 = vshrl.u32 %v4208_v25, 16  ;;  %v2486_v47 = vshll.u32 %v4208_v25, 16  ;;  %v1988_v12 = vmax.f32 %v1970_v51, 0.0  ;;  %3109 = vmatpush1.bf16.msra.mxu0 %v4167_v4  ;;  %v4179_v56 = vld [vmem:[%s5376_s7 + $0x2e0] ss:$8 sps:$4 sm:$0xff]  }
 0x392   : > { %v2494_v14 = vrot.slane %v2492_v11, 3  ;;  %v2497_v35 = vrot.slane %v2495_v29, 4  ;;  %v2472_v36 = vsel %vm1141_vm3, %v5097_v42, %v2471_v31  ;;  %v5145_v37 = vpack.c.bf16 %v1987_v28, %v1985_v26  ;;  %3110 = vmatprep.subr.bf16.mxu0 %v4172_v6  ;;  %v4184_v4 = vld [vmem:[%s5376_s7 + $0x2d4] ss:$8 sps:$4 sm:$0xff]   ;;  %v4185_v59 = vld [vmem:[%s5376_s7 + $0x2c0] ss:$8 sps:$4 sm:$0xff]  }
 0x393   : > { %v1989_v34 = vmax.f32 %v1971_v61, 0.0  ;;  %v5150_v30 = vpack.c.bf16 %v1986_v27, %v1984_v55  ;;  %v2485_v9 = vrot.slane %v2483_v32, 3  ;;  %2731 = vmatmul.mubr.bf16.gmra.mxu1 %v2472_v36  ;;  %v2488_v43 = vrot.slane %v2486_v47, 4  ;;  %v4188_v6 = vld [vmem:[%s5376_s7 + $0x2b0] ss:$8 sps:$4 sm:$0xff]  }
 0x394   : > { %v2498_v41 = vor.u32 %v2497_v35, %v2494_v14  ;;  %v2865_v42 = vshll.u32 %v5018_v33, 16  ;;  %2398 = vmatprep.mubr.bf16.mxu0 %v5145_v37  ;;  %v4213_v49 = vpack.c.bf16 %v1988_v12, %v1986_v27  ;;  %v4214_v18 = vpack.c.bf16 %v1988_v12, %v1988_v12  ;;  %v4182_v27 = vld [vmem:[%s5376_s7 + $0x2d0] ss:$8 sps:$4 sm:$0xff]   ;;  %v4193_v25 = vld [vmem:[%s5376_s7 + $0x2a4] ss:$8 sps:$4 sm:$0xff]  }
 0x395   : > { %v5152_v39 = vpack.c.bf16 %v1989_v34, %v1988_v12  ;;  %v4211_v50 = vpack.c.bf16 %v1989_v34, %v1989_v34  ;;  %v2489_v55 = vor.u32 %v2488_v43, %v2485_v9  ;;  %3111 = vmatpush1.bf16.msra.mxu0 %v4170_v19  ;;  %v4212_v58 = vpack.c.bf16 %v1989_v34, %v1987_v28  ;;  %v4187_v28 = vld [vmem:[%s5376_s7 + $0x2c4] ss:$8 sps:$4 sm:$0xff]   ;;  %v4191_v61 = vld [vmem:[%s5376_s7 + $0x2a0] ss:$8 sps:$4 sm:$0xff]   ;;  %v4196_v11 = vld [vmem:[%s5376_s7 + $0x294] ss:$8 sps:$4 sm:$0xff]  }
 0x396   : > { %2399 = vmatmul.mubr.bf16.gmra.mxu0 %v5150_v30  ;;  %v2499_v38 = vsel %vm1141_vm3, %v2480_v13, %v2498_v41  ;;  %3112 = vmatprep.subr.bf16.mxu0 %v4175_v45  ;;  %v2867_v10 = vrot.slane %v2865_v42, 1  ;;  %v2501_v1 = vshrl.u32 %v4213_v49, 16  ;;  %v2504_v46 = vshll.u32 %v4213_v49, 16  ;;  %v4176_v13 = vld [vmem:[%s5376_s7 + $0x2f0] ss:$8 sps:$4 sm:$0xff]  }
 0x397   : > { %2740 = vmatprep.mubr.bf16.mxu1 %v2499_v38  ;;  %2408 = vmatprep.mubr.bf16.mxu0 %v4211_v50  ;;  %v2490_v2 = vsel %vm1141_vm3, %v2471_v31, %v2489_v55  ;;  %v2510_v26 = vshrl.u32 %v4212_v58, 16  ;;  %v2513_v44 = vshll.u32 %v4212_v58, 16  ;;  %v4194_v29 = vld [vmem:[%s5376_s7 + $0x290] ss:$8 sps:$4 sm:$0xff]   ;;  %v2853_v31 = vshll.u32 %v5023_v62, 16 }
 0x398   : > { %v2503_v16 = vrot.slane %v2501_v1, 3  ;;  %v2506_v54 = vrot.slane %v2504_v46, 4  ;;  %v2868_v20 = vor.u32 %v2867_v10, %v2863_v53  ;;  %v4199_v32 = vld [vmem:[%s5376_s7 + $0x284] ss:$8 sps:$4 sm:$0xff]   ;;  %v2858_v47 = vshll.u32 %v5076_v57, 16 }
 0x399   : > { %3113 = vmatpush1.bf16.msra.mxu0 %v4173_v60  ;;  %v2512_v7 = vrot.slane %v2510_v26, 3  ;;  %v2515_v52 = vrot.slane %v2513_v44, 4  ;;  %v2886_v12 = vshll.u32 %v5114_v48, 16  ;;  %v4197_v34 = vld [vmem:[%s5376_s7 + $0x280] ss:$8 sps:$4 sm:$0xff]   ;;  %v2855_v14 = vrot.slane %v2853_v31, 1 }
 0x39a   : > { %3114 = vmatprep.subr.bf16.mxu0 %v4178_v22  ;;  %v2507_v33 = vor.u32 %v2506_v54, %v2503_v16  ;;  %v2873_v40 = vsel %vm1564_vm4, %v2868_v20, %v2872_v3  ;;  %v2851_v35 = vshrl.u32 %v5023_v62, 16  ;;  %v2860_v36 = vrot.slane %v2858_v47, 1 }
 0x39b   : > { %2741 = vmatmul.mubr.bf16.gmra.mxu1 %v2490_v2  ;;  %v2516_v24 = vor.u32 %v2515_v52, %v2512_v7  ;;  %v2882_v19 = vshrl.u32 %v5071_v23, 16  ;;  %v2888_v9 = vrot.slane %v2886_v12, 1  ;;  %v2878_v42 = vshll.u32 %v5120_v8, 16 }
 0x39c   : > { %v2508_v5 = vsel %vm1141_vm3, %v2489_v55, %v2507_v33  ;;  %v2902_v50 = vshll.u32 %v5145_v37, 16  ;;  %v2776_v55 = vld [vmem:[#allocation3] sm:$0x11]  ;;  %v2874_v62 = vshrl.u32 %v5076_v57, 16  ;;  %v2898_v23 = vshrl.u32 %v5114_v48, 16 }
 0x39d   : > { %3115 = vmatpush2.bf16.msra.mxu0 %v4176_v13  ;;  %v2517_v51 = vsel %vm1141_vm3, %v2498_v41, %v2516_v24  ;;  %v2856_v41 = vor.u32 %v2855_v14, %v2851_v35  ;;  %v2884_v45 = vor.u32 %v2882_v19, %v2872_v3  ;;  %v2880_v0 = vrot.slane %v2878_v42, 1 }
 0x39e   : > { %2409 = vmatmul.mubr.bf16.gmra.mxu0 %v4214_v18  ;;  %2748 = vmatprep.mubr.bf16.mxu1 %v2517_v51  ;;  %v2904_v60 = vrot.slane %v2902_v50, 1  ;;  %v3756_v58 = vcombine.high %v5152_v39, %v2776_v55  ;;  %v2876_v49 = vor.u32 %v2874_v62, %v2860_v36  ;;  %v2900_v2 = vor.u32 %v2898_v23, %v2888_v9 }
 0x39f   : > { %3130 = vmatprep.mubr.bf16.mxu0 %v2873_v40  ;;  %3116 = vmatprep.subr.bf16.mxu0 %v4181_v21  ;;  %v2861_v43 = vsel %vm1564_vm4, %v2856_v41, %v2860_v36  ;;  %v2889_v38 = vsel %vm1564_vm4, %v2884_v45, %v2888_v9  ;;  %v2894_v10 = vshll.u32 %v5150_v30, 16  ;;  %v2890_v1 = vshrl.u32 %v5120_v8, 16 }
 0x3a0   : > { %v2881_v22 = vsel %vm1564_vm4, %v2876_v49, %v2880_v0  ;;  %v2905_v26 = vsel %vm1564_vm4, %v2900_v2, %v2904_v60  ;;  %v2918_v44 = vshll.u32 %v3756_v58, 16  ;;  %v3755_v46 = vcombine.low %v5152_v39, %v2776_v55 }
 0x3a1   : > { %3117 = vmatpush2.bf16.msra.mxu0 %v4179_v56  ;;  %v2896_v57 = vrot.slane %v2894_v10, 1  ;;  %v2914_v48 = vshrl.u32 %v5145_v37, 16  ;;  %v2892_v3 = vor.u32 %v2890_v1, %v2880_v0  ;;  %v2906_v54 = vshrl.u32 %v5150_v30, 16  ;;  %v3221_v10 = vld [vmem:[%s5378_s9] sm:$0x3] }
 0x3a2   : > { %3118 = vmatprep.subr.bf16.mxu0 %v4184_v4  ;;  %v2920_v53 = vrot.slane %v2918_v44, 1  ;;  %v2910_v52 = vshll.u32 %v3755_v46, 16  ;;  %v2925_v8 = vshrl.u32 %v3756_v58, 16  ;;  %v2922_v37 = vshrl.u32 %v3755_v46, 16 }
 0x3a3   : > { %2749 = vmatmul.mubr.bf16.gmra.mxu1 %v2508_v5  ;;  %v2916_v13 = vor.u32 %v2914_v48, %v2904_v60  ;;  %v2897_v7 = vsel %vm1564_vm4, %v2892_v3, %v2896_v57  ;;  %v2908_v20 = vor.u32 %v2906_v54, %v2896_v57  ;;  %v5286_v48 = vrot.slane %v3221_v10, %v4960_v15 }
 0x3a4   : > { %2758 = vmatprep.mubr.bf16.mxu1 %v2516_v24  ;;  %v2912_v18 = vrot.slane %v2910_v52, 1  ;;  %v2927_v39 = vor.u32 %v2925_v8, %v2920_v53 }
 0x3a5   : > { %3119 = vmatpush2.bf16.msra.mxu0 %v4182_v27  ;;  %v2921_v16 = vsel %vm1564_vm4, %v2916_v13, %v2920_v53 }
 0x3a6   : > { %3120 = vmatprep.subr.bf16.mxu0 %v4187_v28  ;;  %v2913_v21 = vsel %vm1564_vm4, %v2908_v20, %v2912_v18  ;;  %v2924_v24 = vor.u32 %v2922_v37, %v2912_v18 }
 0x3a9   : > { %3121 = vmatpush2.bf16.msra.mxu0 %v4185_v59 }
 0x3aa   : > { %3122 = vmatprep.subr.bf16.mxu0 %v4190_v63 }
 0x3ab   : > { %2759 = vmatmul.mubr.bf16.gmra.mxu1 %v2507_v33 }
 0x3ad   : > { %3123 = vmatpush2.bf16.msra.mxu0 %v4188_v6 }
 0x3ae   : > { %3124 = vmatprep.subr.bf16.mxu0 %v4193_v25 }
 0x3b1   : > { %3125 = vmatpush2.bf16.msra.mxu0 %v4191_v61 }
 0x3b2   : > { %3126 = vmatprep.subr.bf16.mxu0 %v4196_v11 }
 0x3b5   : > { %3127 = vmatpush2.bf16.msra.mxu0 %v4194_v29 }
 0x3b6   : > { %3128 = vmatprep.subr.bf16.mxu0 %v4199_v32 }
 0x3b9   : > { %3129 = vmatpush2.bf16.msra.mxu0 %v4197_v34 }
 0x3bc   : > { %3131 = vmatmul.mubr.bf16.vlgmr.msra.gmra.mxu0 %v2861_v43 }
 0x3bd   : > { %3140 = vmatprep.mubr.bf16.mxu0 %v2889_v38 }
 0x3c4   : > { %3141 = vmatmul.mubr.bf16.gmra.mxu0 %v2881_v22  ;;  %v3193_v22 = vld [vmem:[%s5377_s8] sm:$0x3] }
 0x3c5   : > { %3150 = vmatprep.mubr.bf16.mxu0 %v2905_v26  ;;  %v5283_v44 = vrot.slane %v3193_v22, %v4960_v15  ;;  %v5289_v53 = vrot.slane %v3193_v22, %v4967_v17 }
 0x3cc   : > { %3151 = vmatmul.mubr.bf16.gmra.mxu0 %v2897_v7 }
 0x3cd   : > { %3158 = vmatprep.mubr.bf16.mxu0 %v2921_v16  ;;  %v5294_v16 = vrot.slane %v3221_v10, %v4967_v17 }
 0x3d4   : > { %3159 = vmatmul.mubr.bf16.gmra.mxu0 %v2913_v21 }
 0x3d5   : > { %3168 = vmatprep.mubr.bf16.mxu0 %v2927_v39 }
 0x3dc   : > { %3169 = vmatmul.mubr.bf16.gmra.mxu0 %v2924_v24 }
 0x43c   : > { %v2372_v33 = vpop.f32.mrf.mxu0 }
 0x43e   : > { %v2374_v40 = vpop.f32.mrf.mxu0 }
 0x440   : > { %v2376_v51 = vpop.f32.mrf.mxu0 }
 0x442   : > { %v2378_v56 = vpop.f32.mrf.mxu0 }
 0x444   : > { %v2382_v4 = vpop.f32.mrf.mxu0 }
 0x446   : > { %v2384_v5 = vpop.f32.mrf.mxu0 }
 0x448   : > { %v5240_v27 = vpop.f32.mrf.mxu0 }
 0x449   : > { %v2722_v30 = vpop.f32.mrf.mxu1 }
 0x44a   : > { %v5242_v28 = vpop.f32.mrf.mxu0  ;;  %v2723_v26 = vadd.f32 %v2722_v30, %v2372_v33 }
 0x44b   : > { %v2724_v59 = vpop.f32.mrf.mxu1 }
 0x44c   : > { %v2725_v57 = vadd.f32 %v2724_v59, %v2374_v40 }
 0x44d   : > { %v2726_v6 = vpop.f32.mrf.mxu1 }
 0x44e   : > { %v2392_v63 = vpop.f32.mrf.mxu0  ;;  %v2727_v13 = vadd.f32 %v2726_v6, %v2376_v51 }
 0x44f   : > { %v2728_v61 = vpop.f32.mrf.mxu1 }
 0x450   : > { %v2393_v25 = vpop.f32.mrf.mxu0  ;;  %v2729_v18 = vadd.f32 %v2728_v61, %v2378_v56 }
 0x452   : > { %v5244_v11 = vpop.f32.mrf.mxu0 }
 0x453   : > { %v2732_v31 = vpop.f32.mrf.mxu1 }
 0x454   : > { %v5246_v29 = vpop.f32.mrf.mxu0  ;;  %v2733_v21 = vadd.f32 %v2732_v31, %v2382_v4 }
 0x455   : > { %v2734_v32 = vpop.f32.mrf.mxu1 }
 0x456   : > { %v5248_v47 = vpop.f32.mrf.mxu0  ;;  %v2735_v40 = vadd.f32 %v2734_v32, %v2384_v5 }
 0x457   : > { %v2736_v12 = vpop.f32.mrf.mxu1 }
 0x458   : > { %v5250_v34 = vpop.f32.mrf.mxu0  ;;  %v2737_v4 = vadd.f32 %v2736_v12, %v5240_v27 }
 0x459   : > { %v2738_v14 = vpop.f32.mrf.mxu1 }
 0x45a   : > { %v5252_v35 = vpop.f32.mrf.mxu0  ;;  %v2739_v32 = vadd.f32 %v2738_v14, %v5242_v28 }
 0x45b   : > { %v2742_v36 = vpop.f32.mrf.mxu1 }
 0x45c   : > { %v5254_v19 = vpop.f32.mrf.mxu0 }
 0x45d   : > { %v2743_v9 = vpop.f32.mrf.mxu1 }
 0x45e   : > { %v5256_v41 = vpop.f32.mrf.mxu0 }
 0x45f   : > { %v5258_v45 = vpop.f32.mrf.mxu1 }
 0x460   : > { %v5260_v43 = vpop.f32.mrf.mxu0 }
 0x461   : > { %v5262_v42 = vpop.f32.mrf.mxu1 }
 0x462   : > { %v2414_v38 = vpop.f32.mrf.mxu0 }
 0x463   : > { %v5264_v50 = vpop.f32.mrf.mxu1 }
 0x464   : > { %v2415_v55 = vpop.f32.mrf.mxu0 }
 0x465   : > { %v5266_v62 = vpop.f32.mrf.mxu1 }
 0x467   : > { %v5268_v0 = vpop.f32.mrf.mxu1 }
 0x469   : > { %v5270_v23 = vpop.f32.mrf.mxu1 }
 0x46b   : > { %v5272_v60 = vpop.f32.mrf.mxu1 }
 0x46d   : > { %v5274_v58 = vpop.f32.mrf.mxu1 }
 0x46f   : > { %v2764_v49 = vpop.f32.mrf.mxu1 }
 0x471   : > { %v2765_v2 = vpop.f32.mrf.mxu1 }
 0x47c   : > { %v3132_v1 = vpop.f32.mrf.mxu0 }
 0x47d   : > { %v3177_v46 = vadd.f32 %v3132_v1, %v2723_v26 }
 0x47e   : > { %v3134_v3 = vpop.f32.mrf.mxu0 }
 0x47f   : > { %v3205_v7 = vmul.f32 %v5283_v44, %v3177_v46  ;;  %v3178_v52 = vadd.f32 %v3134_v3, %v2725_v57  ;;  %v2745_v46 = vadd.f32 %v5258_v45, %v5244_v11 }
 0x480   : > { %v3136_v54 = vpop.f32.mrf.mxu0 }
 0x481   : > { %v3233_v20 = vadd.f32 %v5286_v48, %v3205_v7  ;;  %v3206_v8 = vmul.f32 %v5289_v53, %v3178_v52  ;;  %v3179_v15 = vadd.f32 %v3136_v54, %v2727_v13  ;;  %v2747_v52 = vadd.f32 %v5262_v42, %v5246_v29 }
 0x482   : > { %v3138_v39 = vpop.f32.mrf.mxu0 }
 0x483   : > { %v3249_v37 = vmax.f32 %v3233_v20, 0.0  ;;  %v3234_v17 = vadd.f32 %v5294_v16, %v3206_v8  ;;  %v3207_v24 = vmul.f32 %v5283_v44, %v3179_v15  ;;  %v3180_v33 = vadd.f32 %v3138_v39, %v2729_v18 }
 0x484   : > { %v3142_v51 = vpop.f32.mrf.mxu0  ;;  %v2751_v8 = vadd.f32 %v5264_v50, %v5248_v47 }
 0x485   : > { %3265 = vst [vmem:[%s5301_s30] sm:$0xff] %v3249_v37  ;;  %v3250_v56 = vmax.f32 %v3234_v17, 0.0  ;;  %v3235_v30 = vadd.f32 %v5286_v48, %v3207_v24  ;;  %v3208_v59 = vmul.f32 %v5289_v53, %v3180_v33  ;;  %v3181_v63 = vadd.f32 %v3142_v51, %v2733_v21 }
 0x486   : > { %v3144_v6 = vpop.f32.mrf.mxu0  ;;  %v2753_v21 = vadd.f32 %v5266_v62, %v5250_v34  ;;  %v2755_v37 = vadd.f32 %v5268_v0, %v5252_v35  ;;  %v2761_v35 = vadd.f32 %v5272_v60, %v5256_v41 }
 0x487   : > { %3266 = vst [vmem:[%s5301_s30 + $0x8] sm:$0xff] %v3250_v56  ;;  %v3251_v25 = vmax.f32 %v3235_v30, 0.0  ;;  %v3236_v61 = vadd.f32 %v5294_v16, %v3208_v59  ;;  %v3209_v31 = vmul.f32 %v5283_v44, %v3181_v63  ;;  %v3182_v5 = vadd.f32 %v3144_v6, %v2735_v40 }
 0x488   : > { %v3146_v36 = vpop.f32.mrf.mxu0  ;;  %v2757_v40 = vadd.f32 %v5270_v23, %v5254_v19 }
 0x489   : > { %3267 = vst [vmem:[%s5301_s30 + $0x10] sm:$0xff] %v3251_v25  ;;  %v3252_v9 = vmax.f32 %v3236_v61, 0.0  ;;  %v3237_v38 = vadd.f32 %v5286_v48, %v3209_v31  ;;  %v3210_v55 = vmul.f32 %v5289_v53, %v3182_v5  ;;  %v3183_v27 = vadd.f32 %v3146_v36, %v2737_v4 }
 0x48a   : > { %v3148_v12 = vpop.f32.mrf.mxu0  ;;  %v2763_v4 = vadd.f32 %v5274_v58, %v5260_v43 }
 0x48b   : > { %3268 = vst [vmem:[%s5301_s30 + $0x18] sm:$0xff] %v3252_v9  ;;  %v3253_v49 = vmax.f32 %v3237_v38, 0.0  ;;  %v3238_v2 = vadd.f32 %v5294_v16, %v3210_v55  ;;  %v3211_v22 = vmul.f32 %v5283_v44, %v3183_v27  ;;  %v3184_v10 = vadd.f32 %v3148_v12, %v2739_v32 }
 0x48c   : > { %v3152_v26 = vpop.f32.mrf.mxu0 }
 0x48d   : > { %3269 = vst [vmem:[%s5301_s30 + $0x20] sm:$0xff] %v3253_v49  ;;  %v3254_v28 = vmax.f32 %v3238_v2, 0.0  ;;  %v3239_v14 = vadd.f32 %v5286_v48, %v3211_v22  ;;  %v3212_v1 = vmul.f32 %v5289_v53, %v3184_v10 }
 0x48e   : > { %v3153_v57 = vpop.f32.mrf.mxu0 }
 0x48f   : > { %3270 = vst [vmem:[%s5301_s30 + $0x28] sm:$0xff] %v3254_v28  ;;  %v3255_v3 = vmax.f32 %v3239_v14, 0.0  ;;  %v3240_v13 = vadd.f32 %v5294_v16, %v3212_v1 }
 0x490   : > { %v3154_v7 = vpop.f32.mrf.mxu0 }
 0x491   : > { %3271 = vst [vmem:[%s5301_s30 + $0x30] sm:$0xff] %v3255_v3  ;;  %v3256_v54 = vmax.f32 %v3240_v13, 0.0  ;;  %v3185_v18 = vadd.f32 %v3154_v7, %v2745_v46 }
 0x492   : > { %v3156_v20 = vpop.f32.mrf.mxu0 }
 0x493   : > { %3272 = vst [vmem:[%s5301_s30 + $0x38] sm:$0xff] %v3256_v54  ;;  %v3213_v15 = vmul.f32 %v5283_v44, %v3185_v18  ;;  %v3186_v11 = vadd.f32 %v3156_v20, %v2747_v52 }
 0x494   : > { %v3160_v45 = vpop.f32.mrf.mxu0 }
 0x495   : > { %v3241_v39 = vadd.f32 %v5286_v48, %v3213_v15  ;;  %v3214_v29 = vmul.f32 %v5289_v53, %v3186_v11  ;;  %v3187_v42 = vadd.f32 %v3160_v45, %v2751_v8 }
 0x496   : > { %v3162_v17 = vpop.f32.mrf.mxu0 }
 0x497   : > { %v3257_v47 = vmax.f32 %v3241_v39, 0.0  ;;  %v3242_v50 = vadd.f32 %v5294_v16, %v3214_v29  ;;  %v3215_v24 = vmul.f32 %v5283_v44, %v3187_v42  ;;  %v3188_v33 = vadd.f32 %v3162_v17, %v2753_v21 }
 0x498   : > { %v3164_v34 = vpop.f32.mrf.mxu0 }
 0x499   : > { %3789 = vst [vmem:[%s5301_s30 + $0x40] sm:$0xff] %v3257_v47  ;;  %v3258_v62 = vmax.f32 %v3242_v50, 0.0  ;;  %v3243_v51 = vadd.f32 %v5286_v48, %v3215_v24  ;;  %v3216_v56 = vmul.f32 %v5289_v53, %v3188_v33  ;;  %v3189_v30 = vadd.f32 %v3164_v34, %v2755_v37 }
 0x49a   : > { %v3166_v0 = vpop.f32.mrf.mxu0 }
 0x49b   : > { %3790 = vst [vmem:[%s5301_s30 + $0x48] sm:$0xff] %v3258_v62  ;;  %v3259_v59 = vmax.f32 %v3243_v51, 0.0  ;;  %v3244_v63 = vadd.f32 %v5294_v16, %v3216_v56  ;;  %v3217_v19 = vmul.f32 %v5283_v44, %v3189_v30  ;;  %v3190_v23 = vadd.f32 %v3166_v0, %v2757_v40 }
 0x49c   : > { %v3170_v6 = vpop.f32.mrf.mxu0 }
 0x49d   : > { %3791 = vst [vmem:[%s5301_s30 + $0x50] sm:$0xff] %v3259_v59  ;;  %v3260_v25 = vmax.f32 %v3244_v63, 0.0  ;;  %v3245_v61 = vadd.f32 %v5286_v48, %v3217_v19  ;;  %v3218_v41 = vmul.f32 %v5289_v53, %v3190_v23  ;;  %v3191_v60 = vadd.f32 %v3170_v6, %v2761_v35 }
 0x49e   : > { %v3172_v31 = vpop.f32.mrf.mxu0 }
 0x49f   : > { %3792 = vst [vmem:[%s5301_s30 + $0x58] sm:$0xff] %v3260_v25  ;;  %v3261_v5 = vmax.f32 %v3245_v61, 0.0  ;;  %v3246_v32 = vadd.f32 %v5294_v16, %v3218_v41  ;;  %v3219_v36 = vmul.f32 %v5283_v44, %v3191_v60  ;;  %v3192_v9 = vadd.f32 %v3172_v31, %v2763_v4 }
 0x4a0   : > { %v3174_v43 = vpop.f32.mrf.mxu0 }
 0x4a1   : > { %3793 = vst [vmem:[%s5301_s30 + $0x60] sm:$0xff] %v3261_v5  ;;  %v3262_v58 = vmax.f32 %v3246_v32, 0.0  ;;  %v3247_v38 = vadd.f32 %v5286_v48, %v3219_v36  ;;  %v3220_v55 = vmul.f32 %v5289_v53, %v3192_v9 }
 0x4a2   : > { %v3175_v27 = vpop.f32.mrf.mxu0 }
 0x4a3   : > { %3794 = vst [vmem:[%s5301_s30 + $0x68] sm:$0xff] %v3262_v58  ;;  %v3263_v12 = vmax.f32 %v3247_v38, 0.0  ;;  %v3248_v49 = vadd.f32 %v5294_v16, %v3220_v55 }
 0x4a5   : > { %3795 = vst [vmem:[%s5301_s30 + $0x70] sm:$0xff] %v3263_v12  ;;  %v3264_v2 = vmax.f32 %v3248_v49, 0.0 }
 0x4a7   : > { %3796 = vst [vmem:[%s5301_s30 + $0x78] sm:$0xff] %v3264_v2 }
 0x4a8 PF: > { %s20_s13 = sadd.s32 1, %s4221_s13  }
 0x4a9   : > { %p17_p4 = scmp.ge.s32.totalorder %s20_s13, 4  }
 0x4ab   :  { %19 = sbr.rel (!%p17_p4) target bundleno = 1 (0x1), region = 100 }

</bundles_post_ra>
